<compile_context>
chip_gen: v7x
topology: tpu7x:2x2x1
jax: 0.10.0
libtpu: 0.0.40
codegen_flags: <defaults>
</compile_context>

<pallas_src>
import numpy as np
import jax
import jax.numpy as jnp
from jax.experimental import pallas as pl
from jax.experimental.pallas import tpu as pltpu

# ----------------------------- configuration --------------------------------
CFG = dict(
    num_mels=16, mel_len=16, patch_size=4, in_chans=1,
    embed_dim=32, encoder_channels=[32, 32, 32],
    decoder_embed_dim=24, decoder_channels=[24, 24, 24],
    kernel_size=2, mask_ratio=0.8,
)

# ------------------------ sincos position embeddings -------------------------
def get_1d_sincos_pos_embed_from_grid(embed_dim, pos):
    assert embed_dim % 2 == 0
    omega = np.arange(embed_dim // 2, dtype=np.float64)
    omega /= embed_dim / 2.0
    omega = 1.0 / 10000 ** omega
    pos = pos.reshape(-1)
    out = np.einsum('m,d->md', pos, omega)
    return np.concatenate([np.sin(out), np.cos(out)], axis=1)


def get_2d_sincos_pos_embed(embed_dim, grid_hw):
    gh, gw = grid_hw
    grid_h = np.arange(gh, dtype=np.float32)
    grid_w = np.arange(gw, dtype=np.float32)
    grid = np.meshgrid(grid_w, grid_h)            # w goes first (MAE convention)
    grid = np.stack(grid, axis=0).reshape([2, 1, gh, gw])
    emb_h = get_1d_sincos_pos_embed_from_grid(embed_dim // 2, grid[0])
    emb_w = get_1d_sincos_pos_embed_from_grid(embed_dim // 2, grid[1])
    return np.concatenate([emb_h, emb_w], axis=1).astype(np.float32)


# -------------------------- static weight-slab plan ---------------------------
def _make_plan(cfg):
    p = cfg['patch_size']
    C = cfg['in_chans']
    E = cfg['embed_dim']
    D = cfg['decoder_embed_dim']
    gh = cfg['mel_len'] // p
    gw = cfg['num_mels'] // p
    L = gh * gw
    PP = p * p * C
    layout = {}
    rows = 0

    def add_block(entries):
        # entries: list of (name, n_rows, n_cols); lane-packed side by side,
        # block start row is 8-aligned -> all ref loads are at aligned offsets.
        nonlocal rows
        r0, col, h = rows, 0, 0
        for name, r, w in entries:
            assert col + w <= 128, 'lane overflow in slab block'
            layout[name] = (r0, r, col, w)
            col += w
            h = max(h, r)
        rows = r0 + ((h + 7) // 8) * 8

    add_block([('patch_w', PP, E), ('patch_b', 1, E),
               ('pos_embed', L, E), ('dec_pos_embed', L, D)])
    add_block([('dec_embed_w', cfg['encoder_channels'][-1], D), ('dec_embed_b', 1, D),
               ('dec_pred_w', cfg['decoder_channels'][-1], PP), ('dec_pred_b', 1, PP),
               ('mask_token', 1, D)])

    def tcn_plan(prefix, cin, channels):
        specs = []
        for lvl, cout in enumerate(channels):
            def nm(k, _p=prefix, _l=lvl):
                return f'{_p}{_l}_{k}'
            add_block([(nm('w1'), 2 * cin, cout), (nm('w2'), 2 * cout, cout),
                       (nm('b1'), 1, cout), (nm('b2'), 1, cout)])
            down = None
            if cin != cout:
                add_block([(nm('wd'), cin, cout), (nm('bd'), 1, cout)])
                down = (nm('wd'), nm('bd'))
            specs.append(dict(d=2 ** lvl, cin=cin, cout=cout, down=down,
                              w1=nm('w1'), w2=nm('w2'), b1=nm('b1'), b2=nm('b2')))
            cin = cout
        return specs

    enc = tcn_plan('enc', E, cfg['encoder_channels'])
    dec = tcn_plan('dec', D, cfg['decoder_channels'])
    dims = dict(L=L, PP=PP, E=E, D=D, gh=gh, gw=gw,
                LK=int(L * (1 - cfg['mask_ratio'])))
    return layout, enc, dec, max(rows, 8), dims


_LAYOUT, _ENC, _DEC, _SLAB_ROWS, _DIMS = _make_plan(CFG)


# ----------------------------- parameter init --------------------------------
def init_params(key):
    p = CFG['patch_size']
    C = CFG['in_chans']
    E, D, PP = _DIMS['E'], _DIMS['D'], _DIMS['PP']
    slab = np.zeros((_SLAB_ROWS, 128), np.float32)

    def put(name, arr):
        r0, r, c0, w = _LAYOUT[name]
        slab[r0:r0 + r, c0:c0 + w] = np.asarray(arr, np.float32).reshape(r, w)

    keys = iter(jax.random.split(key, 64))

    def nrm(shape, std):
        return std * np.asarray(jax.random.normal(next(keys), shape, dtype=jnp.float32))

    # PatchEmbed Conv2d(C, E, k=p, s=p) folded to a per-patch linear (C*p*p, E).
    put('patch_w', nrm((E, C * p * p), 0.02).T)
    put('patch_b', np.zeros((1, E), np.float32))
    put('pos_embed', get_2d_sincos_pos_embed(E, (_DIMS['gh'], _DIMS['gw'])))
    put('dec_pos_embed', get_2d_sincos_pos_embed(D, (_DIMS['gh'], _DIMS['gw'])))
    put('mask_token', nrm((1, D), 0.02))
    put('dec_embed_w', nrm((CFG['encoder_channels'][-1], D), 0.02))
    put('dec_embed_b', np.zeros((1, D), np.float32))
    put('dec_pred_w', nrm((CFG['decoder_channels'][-1], PP), 0.02))
    put('dec_pred_b', np.zeros((1, PP), np.float32))

    # TODO(synk): weight_norm (g * v/||v||) is assumed pre-folded into the
    # effective Conv1d weights; dropout layers are eval-mode identity.
    def fill_tcn(specs):
        for s in specs:
            cin, cout = s['cin'], s['cout']
            w1 = nrm((cout, cin, 2), 0.01)       # PyTorch Conv1d layout (Cout,Cin,k)
            w2 = nrm((cout, cout, 2), 0.01)
            # Merged taps: rows [0:Cin] multiply x[t-d], rows [Cin:2Cin] multiply x[t].
            put(s['w1'], np.concatenate([w1[:, :, 0].T, w1[:, :, 1].T], axis=0))
            put(s['w2'], np.concatenate([w2[:, :, 0].T, w2[:, :, 1].T], axis=0))
            put(s['b1'], np.zeros((1, cout), np.float32))
            put(s['b2'], np.zeros((1, cout), np.float32))
            if s['down'] is not None:
                put(s['down'][0], nrm((cin, cout), 0.01))
                put(s['down'][1], np.zeros((1, cout), np.float32))

    fill_tcn(_ENC)
    fill_tcn(_DEC)
    return {'slab': jnp.asarray(slab)}


# ------------------------------- fused kernel --------------------------------
def _build_kernel(Nb):
    L, PP, E, D, LK = (_DIMS[k] for k in ('L', 'PP', 'E', 'D', 'LK'))

    def get(slab, name):
        r0, r, c0, w = _LAYOUT[name]
        return slab[r0:r0 + r, c0:c0 + w]          # static slice of the slab ref

    def mm(x, w, b):                               # (Nb, l, K) @ (K, C) + (1, C)
        n, l, k = x.shape
        y = jnp.dot(x.reshape(n * l, k), w, preferred_element_type=jnp.float32) + b
        return y.reshape(n, l, w.shape[1])

    def delayed(x, d):                             # causal x[t-d], zero padded
        n, l, c = x.shape
        if d >= l:
            return jnp.zeros_like(x)
        return jnp.concatenate(
            [jnp.zeros((n, d, c), x.dtype), x[:, :l - d, :]], axis=1)

    def temporal_block(x, slab, s):                # conv1/conv2/residual, eval mode
        d = s['d']
        h = jnp.concatenate([delayed(x, d), x], axis=-1)
        h = jnp.maximum(mm(h, get(slab, s['w1']), get(slab, s['b1'])), 0.0)
        h2 = jnp.concatenate([delayed(h, d), h], axis=-1)
        h2 = jnp.maximum(mm(h2, get(slab, s['w2']), get(slab, s['b2'])), 0.0)
        if s['down'] is not None:
            res = mm(x, get(slab, s['down'][0]), get(slab, s['down'][1]))
        else:
            res = x
        return jnp.maximum(h2 + res, 0.0)

    def kernel(idsk_ref, idsr_ref, patches_ref, slab_ref, pred_ref, loss_ref,
               x_scr, xk_scr, xs_scr, xf_scr):
        g = pl.program_id(0)
        patches = patches_ref[...]                              # (Nb, L, PP)

        # ---- forward_encoder: patch embed + pos embed --------------------
        x = mm(patches, get(slab_ref, 'patch_w'), get(slab_ref, 'patch_b'))
        x = x + get(slab_ref, 'pos_embed')                      # (Nb, L, E)
        x_scr[...] = x

        # ---- random masking: keep-gather (ids from SMEM, dynamic slices) --
        for n in range(Nb):
            row = g * Nb + n
            for i in range(LK):
                idx = idsk_ref[row, i]
                xk_scr[n, i:i + 1, :] = x_scr[n, pl.ds(idx, 1), :]
        xk = xk_scr[...]                                        # (Nb, LK, E)

        # ---- encoder TCN + decoder_embed ----------------------------------
        for s in _ENC:
            xk = temporal_block(xk, slab_ref, s)
        xd = mm(xk, get(slab_ref, 'dec_embed_w'), get(slab_ref, 'dec_embed_b'))

        # ---- unshuffle with mask tokens + decoder pos embed ---------------
        mtok = get(slab_ref, 'mask_token')                      # (1, D)
        xs_scr[...] = jnp.broadcast_to(mtok, (Nb, L, D))
        xs_scr[:, 0:LK, :] = xd
        for n in range(Nb):
            row = g * Nb + n
            for t in range(L):
                ridx = idsr_ref[row, t]
                xf_scr[n, t:t + 1, :] = xs_scr[n, pl.ds(ridx, 1), :]
        xf = xf_scr[...] + get(slab_ref, 'dec_pos_embed')       # (Nb, L, D)

        # ---- decoder TCN + decoder_pred -----------------------------------
        for s in _DEC:
            xf = temporal_block(xf, slab_ref, s)
        pred = mm(xf, get(slab_ref, 'dec_pred_w'), get(slab_ref, 'dec_pred_b'))
        pred_ref[...] = pred

        # ---- fused MSE partial sum (target == patches for in_chans == 1) --
        diff = pred - patches
        loss_ref[...] = jnp.sum(diff * diff, keepdims=True)

    return kernel


def _flops_per_sample():
    L, PP, E, D, LK = (_DIMS[k] for k in ('L', 'PP', 'E', 'D', 'LK'))
    f = 2 * L * PP * E + 2 * LK * _ENC[-1]['cout'] * D + 2 * L * _DEC[-1]['cout'] * PP
    for s, l in [(s, LK) for s in _ENC] + [(s, L) for s in _DEC]:
        f += 2 * l * (2 * s['cin']) * s['cout'] + 2 * l * (2 * s['cout']) * s['cout']
        if s['down'] is not None:
            f += 2 * l * s['cin'] * s['cout']
    return f


def _fused_forward(slab, patches, ids_keep, ids_restore):
    N, L, PP = patches.shape
    E, D, LK = _DIMS['E'], _DIMS['D'], _DIMS['LK']
    # 2 "parallel" batch blocks -> one per v7x TensorCore; single block otherwise.
    num_blocks = 2 if (N % 2 == 0 and N >= 2) else 1
    Nb = N // num_blocks

    cost = pl.CostEstimate(
        flops=int(N * _flops_per_sample()), transcendentals=0,
        bytes_accessed=int(4 * (2 * N * L * PP + _SLAB_ROWS * 128 + N * (LK + L))))

    grid_spec = pltpu.PrefetchScalarGridSpec(
        num_scalar_prefetch=2,                      # ids_keep, ids_restore -> SMEM
        grid=(num_blocks,),
        in_specs=[pl.BlockSpec((Nb, L, PP), lambda g, *_: (g, 0, 0)),
                  pl.BlockSpec((_SLAB_ROWS, 128), lambda g, *_: (0, 0))],
        out_specs=(pl.BlockSpec((Nb, L, PP), lambda g, *_: (g, 0, 0)),
                   pl.BlockSpec((1, 1, 1), lambda g, *_: (g, 0, 0))),
        scratch_shapes=[pltpu.VMEM((Nb, L, E), jnp.float32),
                        pltpu.VMEM((Nb, LK, E), jnp.float32),
                        pltpu.VMEM((Nb, L, D), jnp.float32),
                        pltpu.VMEM((Nb, L, D), jnp.float32)],
    )
    pred, loss_parts = pl.pallas_call(
        _build_kernel(Nb),
        out_shape=(jax.ShapeDtypeStruct((N, L, PP), jnp.float32),
                   jax.ShapeDtypeStruct((num_blocks, 1, 1), jnp.float32)),
        grid_spec=grid_spec,
        compiler_params=pltpu.CompilerParams(dimension_semantics=("parallel",)),
        cost_estimate=cost,
    )(ids_keep, ids_restore, patches, slab)
    return pred, loss_parts


# ------------------------------- model glue ----------------------------------
def patchify(imgs):
    N, C, H, W = imgs.shape
    p = CFG['patch_size']
    gh, gw = H // p, W // p
    x = imgs.reshape(N, C, gh, p, gw, p).transpose(0, 2, 4, 1, 3, 5)
    return x.reshape(N, gh * gw, p * p * C)


def unpatchify(x):
    N, L, _ = x.shape
    p = CFG['patch_size']
    gh = CFG['mel_len'] // p
    gw = CFG['num_mels'] // p
    x = x.reshape(N, gh, gw, p, p, 1)
    x = x.transpose(0, 5, 1, 3, 2, 4)
    return x.reshape(N, 1, gh * p, gw * p)


def forward(params, imgs, mask_key):
    N = imgs.shape[0]
    L, PP, LK = _DIMS['L'], _DIMS['PP'], _DIMS['LK']

    # Patch extraction; for in_chans == 1 this is also the MSE target (patchify).
    patches = patchify(imgs)

    # random_masking indices (argsort has no Pallas equivalent -> XLA glue;
    # torch.rand replaced by jax.random, same algorithm).
    noise = jax.random.uniform(mask_key, (N, L))
    ids_shuffle = jnp.argsort(noise, axis=1)
    ids_restore = jnp.argsort(ids_shuffle, axis=1).astype(jnp.int32)
    ids_keep = ids_shuffle[:, :LK].astype(jnp.int32)
    mask = (ids_restore >= LK).astype(jnp.float32)        # 0 = keep, 1 = remove

    pred, loss_parts = _fused_forward(params['slab'], patches, ids_keep, ids_restore)

    # forward_loss (reference): ((pred - target)**2).mean(-1).sum()
    loss = jnp.sum(loss_parts) / PP
    return loss, unpatchify(pred), mask


if __name__ == "__main__":
    root = jax.random.PRNGKey(0)
    pkey, xkey, mkey = jax.random.split(root, 3)
    params = init_params(pkey)
    imgs = jax.random.normal(
        xkey, (2, CFG['in_chans'], CFG['mel_len'], CFG['num_mels']), dtype=jnp.float32)

    loss, pred, mask = jax.jit(forward)(params, imgs, mkey)
    jax.block_until_ready((loss, pred, mask))

    L = _DIMS['L']
    assert pred.shape == imgs.shape
    assert mask.shape == (2, L)
    assert loss.shape == ()
    print("KERNEL_OK")
</pallas_src>

<mosaic_0001>
module attributes {stable_mosaic.version = 11 : i64} {
  func.func @kernel(%arg0: i32, %arg1: memref<2x3xi32, #tpu.memory_space<smem>>, %arg2: memref<2x16xi32, #tpu.memory_space<smem>>, %arg3: memref<1x16x16xf32, #tpu.memory_space<vmem>>, %arg4: memref<384x128xf32, #tpu.memory_space<vmem>>, %arg5: memref<1x16x16xf32, #tpu.memory_space<vmem>>, %arg6: memref<1x1x1xf32, #tpu.memory_space<vmem>>, %arg7: memref<1x16x32xf32, #tpu.memory_space<vmem>>, %arg8: memref<1x3x32xf32, #tpu.memory_space<vmem>>, %arg9: memref<1x16x24xf32, #tpu.memory_space<vmem>>, %arg10: memref<1x16x24xf32, #tpu.memory_space<vmem>>) attributes {dimension_semantics = [#tpu.dimension_semantics<parallel>], iteration_bounds = array<i64: 2>, scalar_prefetch = 2 : i64, scratch_operands = 4 : i64, tpu.core_type = #tpu.core_type<tc>, window_params = [{transform_indices = @transform_0, window_bounds = array<i64: 1, 16, 16>}, {pipeline_mode = #tpu.pipeline_mode<synchronous>, transform_indices = @transform_1, window_bounds = array<i64: 384, 128>}, {transform_indices = @transform_2, window_bounds = array<i64: 1, 16, 16>}, {transform_indices = @transform_3, window_bounds = array<i64: 1, 1, 1>}]} {
    %c0 = arith.constant 0 : index
    %c0_0 = arith.constant 0 : index
    %c0_1 = arith.constant 0 : index
    %0 = vector.load %arg3[%c0, %c0_0, %c0_1] : memref<1x16x16xf32, #tpu.memory_space<vmem>>, vector<1x16x16xf32>
    %c0_2 = arith.constant 0 : index
    %c0_3 = arith.constant 0 : index
    %1 = vector.load %arg4[%c0_2, %c0_3] : memref<384x128xf32, #tpu.memory_space<vmem>>, vector<16x32xf32>
    %c0_4 = arith.constant 0 : index
    %c32 = arith.constant 32 : index
    %2 = vector.load %arg4[%c0_4, %c32] : memref<384x128xf32, #tpu.memory_space<vmem>>, vector<1x32xf32>
    %3 = vector.shape_cast %0 : vector<1x16x16xf32> to vector<16x16xf32>
    %cst = arith.constant dense<0.000000e+00> : vector<16x32xf32>
    %4 = tpu.matmul %3, %1, %cst {dimension_numbers = #tpu.dot_dimension_numbers<[1], [0], [0], [1], [0, 0, 1, 1], [], []>} : vector<16x16xf32>, vector<16x32xf32>, vector<16x32xf32> -> vector<16x32xf32>
    %5 = vector.broadcast %2 : vector<1x32xf32> to vector<16x32xf32>
    %6 = arith.addf %4, %5 : vector<16x32xf32>
    %7 = vector.shape_cast %6 : vector<16x32xf32> to vector<1x16x32xf32>
    %c0_5 = arith.constant 0 : index
    %c64 = arith.constant 64 : index
    %8 = vector.load %arg4[%c0_5, %c64] : memref<384x128xf32, #tpu.memory_space<vmem>>, vector<16x32xf32>
    %9 = vector.shape_cast %8 : vector<16x32xf32> to vector<1x16x32xf32>
    %10 = arith.addf %7, %9 : vector<1x16x32xf32>
    %c0_6 = arith.constant 0 : index
    %c0_7 = arith.constant 0 : index
    %c0_8 = arith.constant 0 : index
    %11 = vector.load %arg7[%c0_6, %c0_7, %c0_8] : memref<1x16x32xf32, #tpu.memory_space<vmem>>, vector<1x16x32xf32>
    tpu.vector_store %arg7[%c0_6, %c0_7, %c0_8], %10 {strides = array<i32>} : memref<1x16x32xf32, #tpu.memory_space<vmem>>, vector<1x16x32xf32>,
    %c1_i32 = arith.constant 1 : i32
    %12 = arith.muli %arg0, %c1_i32 : i32
    %c0_i32 = arith.constant 0 : i32
    %13 = arith.addi %12, %c0_i32 : i32
    %14 = arith.index_cast %13 : i32 to index
    %c0_9 = arith.constant 0 : index
    %15 = memref.load %arg1[%14, %c0_9] : memref<2x3xi32, #tpu.memory_space<smem>>
    %c0_10 = arith.constant 0 : index
    %16 = arith.index_cast %15 : i32 to index
    %c0_11 = arith.constant 0 : index
    %17 = vector.load %arg7[%c0_10, %16, %c0_11] : memref<1x16x32xf32, #tpu.memory_space<vmem>>, vector<1x1x32xf32>
    %18 = vector.shape_cast %17 : vector<1x1x32xf32> to vector<1x32xf32>
    %c0_12 = arith.constant 0 : index
    %c0_13 = arith.constant 0 : index
    %c0_14 = arith.constant 0 : index
    %19 = vector.load %arg8[%c0_12, %c0_13, %c0_14] : memref<1x3x32xf32, #tpu.memory_space<vmem>>, vector<1x1x32xf32>
    %20 = vector.shape_cast %19 : vector<1x1x32xf32> to vector<1x32xf32>
    %21 = vector.shape_cast %18 : vector<1x32xf32> to vector<1x1x32xf32>
    tpu.vector_store %arg8[%c0_12, %c0_13, %c0_14], %21 {strides = array<i32>} : memref<1x3x32xf32, #tpu.memory_space<vmem>>, vector<1x1x32xf32>,
    %22 = arith.index_cast %13 : i32 to index
    %c1 = arith.constant 1 : index
    %23 = memref.load %arg1[%22, %c1] : memref<2x3xi32, #tpu.memory_space<smem>>
    %c0_15 = arith.constant 0 : index
    %24 = arith.index_cast %23 : i32 to index
    %c0_16 = arith.constant 0 : index
    %25 = vector.load %arg7[%c0_15, %24, %c0_16] : memref<1x16x32xf32, #tpu.memory_space<vmem>>, vector<1x1x32xf32>
    %26 = vector.shape_cast %25 : vector<1x1x32xf32> to vector<1x32xf32>
    %c0_17 = arith.constant 0 : index
    %c1_18 = arith.constant 1 : index
    %c0_19 = arith.constant 0 : index
    %27 = vector.load %arg8[%c0_17, %c1_18, %c0_19] : memref<1x3x32xf32, #tpu.memory_space<vmem>>, vector<1x1x32xf32>
    %28 = vector.shape_cast %27 : vector<1x1x32xf32> to vector<1x32xf32>
    %29 = vector.shape_cast %26 : vector<1x32xf32> to vector<1x1x32xf32>
    tpu.vector_store %arg8[%c0_17, %c1_18, %c0_19], %29 {strides = array<i32>} : memref<1x3x32xf32, #tpu.memory_space<vmem>>, vector<1x1x32xf32>,
    %30 = arith.index_cast %13 : i32 to index
    %c2 = arith.constant 2 : index
    %31 = memref.load %arg1[%30, %c2] : memref<2x3xi32, #tpu.memory_space<smem>>
    %c0_20 = arith.constant 0 : index
    %32 = arith.index_cast %31 : i32 to index
    %c0_21 = arith.constant 0 : index
    %33 = vector.load %arg7[%c0_20, %32, %c0_21] : memref<1x16x32xf32, #tpu.memory_space<vmem>>, vector<1x1x32xf32>
    %34 = vector.shape_cast %33 : vector<1x1x32xf32> to vector<1x32xf32>
    %c0_22 = arith.constant 0 : index
    %c2_23 = arith.constant 2 : index
    %c0_24 = arith.constant 0 : index
    %35 = vector.load %arg8[%c0_22, %c2_23, %c0_24] : memref<1x3x32xf32, #tpu.memory_space<vmem>>, vector<1x1x32xf32>
    %36 = vector.shape_cast %35 : vector<1x1x32xf32> to vector<1x32xf32>
    %37 = vector.shape_cast %34 : vector<1x32xf32> to vector<1x1x32xf32>
    tpu.vector_store %arg8[%c0_22, %c2_23, %c0_24], %37 {strides = array<i32>} : memref<1x3x32xf32, #tpu.memory_space<vmem>>, vector<1x1x32xf32>,
    %c0_25 = arith.constant 0 : index
    %c0_26 = arith.constant 0 : index
    %c0_27 = arith.constant 0 : index
    %38 = vector.load %arg8[%c0_25, %c0_26, %c0_27] : memref<1x3x32xf32, #tpu.memory_space<vmem>>, vector<1x3x32xf32>
    %cst_28 = arith.constant 0.000000e+00 : f32
    %39 = vector.broadcast %cst_28 : f32 to vector<1x1x32xf32>
    %40 = vector.extract_strided_slice %38 {offsets = [0, 0, 0], sizes = [1, 2, 32], strides = [1, 1, 1]} : vector<1x3x32xf32> to vector<1x2x32xf32>
    %41 = tpu.concatenate %39, %40 in 1 : vector<1x1x32xf32>, vector<1x2x32xf32> -> vector<1x3x32xf32>
    %42 = tpu.concatenate %41, %38 in 2 : vector<1x3x32xf32>, vector<1x3x32xf32> -> vector<1x3x64xf32>
    %c48 = arith.constant 48 : index
    %c0_29 = arith.constant 0 : index
    %43 = vector.load %arg4[%c48, %c0_29] : memref<384x128xf32, #tpu.memory_space<vmem>>, vector<64x32xf32>
    %c48_30 = arith.constant 48 : index
    %c64_31 = arith.constant 64 : index
    %44 = vector.load %arg4[%c48_30, %c64_31] : memref<384x128xf32, #tpu.memory_space<vmem>>, vector<1x32xf32>
    %45 = vector.shape_cast %42 : vector<1x3x64xf32> to vector<3x64xf32>
    %cst_32 = arith.constant dense<0.000000e+00> : vector<3x32xf32>
    %46 = tpu.matmul %45, %43, %cst_32 {dimension_numbers = #tpu.dot_dimension_numbers<[1], [0], [0], [1], [0, 0, 1, 1], [], []>} : vector<3x64xf32>, vector<64x32xf32>, vector<3x32xf32> -> vector<3x32xf32>
    %47 = vector.broadcast %44 : vector<1x32xf32> to vector<3x32xf32>
    %48 = arith.addf %46, %47 : vector<3x32xf32>
    %49 = vector.shape_cast %48 : vector<3x32xf32> to vector<1x3x32xf32>
    %cst_33 = arith.constant 0.000000e+00 : f32
    %50 = vector.broadcast %cst_33 : f32 to vector<1x3x32xf32>
    %51 = arith.maximumf %49, %50 : vector<1x3x32xf32>
    %cst_34 = arith.constant 0.000000e+00 : f32
    %52 = vector.broadcast %cst_34 : f32 to vector<1x1x32xf32>
    %53 = vector.extract_strided_slice %51 {offsets = [0, 0, 0], sizes = [1, 2, 32], strides = [1, 1, 1]} : vector<1x3x32xf32> to vector<1x2x32xf32>
    %54 = tpu.concatenate %52, %53 in 1 : vector<1x1x32xf32>, vector<1x2x32xf32> -> vector<1x3x32xf32>
    %55 = tpu.concatenate %54, %51 in 2 : vector<1x3x32xf32>, vector<1x3x32xf32> -> vector<1x3x64xf32>
    %c48_35 = arith.constant 48 : index
    %c32_36 = arith.constant 32 : index
    %56 = vector.load %arg4[%c48_35, %c32_36] : memref<384x128xf32, #tpu.memory_space<vmem>>, vector<64x32xf32>
    %c48_37 = arith.constant 48 : index
    %c96 = arith.constant 96 : index
    %57 = vector.load %arg4[%c48_37, %c96] : memref<384x128xf32, #tpu.memory_space<vmem>>, vector<1x32xf32>
    %58 = vector.shape_cast %55 : vector<1x3x64xf32> to vector<3x64xf32>
    %cst_38 = arith.constant dense<0.000000e+00> : vector<3x32xf32>
    %59 = tpu.matmul %58, %56, %cst_38 {dimension_numbers = #tpu.dot_dimension_numbers<[1], [0], [0], [1], [0, 0, 1, 1], [], []>} : vector<3x64xf32>, vector<64x32xf32>, vector<3x32xf32> -> vector<3x32xf32>
    %60 = vector.broadcast %57 : vector<1x32xf32> to vector<3x32xf32>
    %61 = arith.addf %59, %60 : vector<3x32xf32>
    %62 = vector.shape_cast %61 : vector<3x32xf32> to vector<1x3x32xf32>
    %cst_39 = arith.constant 0.000000e+00 : f32
    %63 = vector.broadcast %cst_39 : f32 to vector<1x3x32xf32>
    %64 = arith.maximumf %62, %63 : vector<1x3x32xf32>
    %65 = arith.addf %64, %38 : vector<1x3x32xf32>
    %cst_40 = arith.constant 0.000000e+00 : f32
    %66 = vector.broadcast %cst_40 : f32 to vector<1x3x32xf32>
    %67 = arith.maximumf %65, %66 : vector<1x3x32xf32>
    %cst_41 = arith.constant 0.000000e+00 : f32
    %68 = vector.broadcast %cst_41 : f32 to vector<1x2x32xf32>
    %69 = vector.extract_strided_slice %67 {offsets = [0, 0, 0], sizes = [1, 1, 32], strides = [1, 1, 1]} : vector<1x3x32xf32> to vector<1x1x32xf32>
    %70 = tpu.concatenate %68, %69 in 1 : vector<1x2x32xf32>, vector<1x1x32xf32> -> vector<1x3x32xf32>
    %71 = tpu.concatenate %70, %67 in 2 : vector<1x3x32xf32>, vector<1x3x32xf32> -> vector<1x3x64xf32>
    %c112 = arith.constant 112 : index
    %c0_42 = arith.constant 0 : index
    %72 = vector.load %arg4[%c112, %c0_42] : memref<384x128xf32, #tpu.memory_space<vmem>>, vector<64x32xf32>
    %c112_43 = arith.constant 112 : index
    %c64_44 = arith.constant 64 : index
    %73 = vector.load %arg4[%c112_43, %c64_44] : memref<384x128xf32, #tpu.memory_space<vmem>>, vector<1x32xf32>
    %74 = vector.shape_cast %71 : vector<1x3x64xf32> to vector<3x64xf32>
    %cst_45 = arith.constant dense<0.000000e+00> : vector<3x32xf32>
    %75 = tpu.matmul %74, %72, %cst_45 {dimension_numbers = #tpu.dot_dimension_numbers<[1], [0], [0], [1], [0, 0, 1, 1], [], []>} : vector<3x64xf32>, vector<64x32xf32>, vector<3x32xf32> -> vector<3x32xf32>
    %76 = vector.broadcast %73 : vector<1x32xf32> to vector<3x32xf32>
    %77 = arith.addf %75, %76 : vector<3x32xf32>
    %78 = vector.shape_cast %77 : vector<3x32xf32> to vector<1x3x32xf32>
    %cst_46 = arith.constant 0.000000e+00 : f32
    %79 = vector.broadcast %cst_46 : f32 to vector<1x3x32xf32>
    %80 = arith.maximumf %78, %79 : vector<1x3x32xf32>
    %cst_47 = arith.constant 0.000000e+00 : f32
    %81 = vector.broadcast %cst_47 : f32 to vector<1x2x32xf32>
    %82 = vector.extract_strided_slice %80 {offsets = [0, 0, 0], sizes = [1, 1, 32], strides = [1, 1, 1]} : vector<1x3x32xf32> to vector<1x1x32xf32>
    %83 = tpu.concatenate %81, %82 in 1 : vector<1x2x32xf32>, vector<1x1x32xf32> -> vector<1x3x32xf32>
    %84 = tpu.concatenate %83, %80 in 2 : vector<1x3x32xf32>, vector<1x3x32xf32> -> vector<1x3x64xf32>
    %c112_48 = arith.constant 112 : index
    %c32_49 = arith.constant 32 : index
    %85 = vector.load %arg4[%c112_48, %c32_49] : memref<384x128xf32, #tpu.memory_space<vmem>>, vector<64x32xf32>
    %c112_50 = arith.constant 112 : index
    %c96_51 = arith.constant 96 : index
    %86 = vector.load %arg4[%c112_50, %c96_51] : memref<384x128xf32, #tpu.memory_space<vmem>>, vector<1x32xf32>
    %87 = vector.shape_cast %84 : vector<1x3x64xf32> to vector<3x64xf32>
    %cst_52 = arith.constant dense<0.000000e+00> : vector<3x32xf32>
    %88 = tpu.matmul %87, %85, %cst_52 {dimension_numbers = #tpu.dot_dimension_numbers<[1], [0], [0], [1], [0, 0, 1, 1], [], []>} : vector<3x64xf32>, vector<64x32xf32>, vector<3x32xf32> -> vector<3x32xf32>
    %89 = vector.broadcast %86 : vector<1x32xf32> to vector<3x32xf32>
    %90 = arith.addf %88, %89 : vector<3x32xf32>
    %91 = vector.shape_cast %90 : vector<3x32xf32> to vector<1x3x32xf32>
    %cst_53 = arith.constant 0.000000e+00 : f32
    %92 = vector.broadcast %cst_53 : f32 to vector<1x3x32xf32>
    %93 = arith.maximumf %91, %92 : vector<1x3x32xf32>
    %94 = arith.addf %93, %67 : vector<1x3x32xf32>
    %cst_54 = arith.constant 0.000000e+00 : f32
    %95 = vector.broadcast %cst_54 : f32 to vector<1x3x32xf32>
    %96 = arith.maximumf %94, %95 : vector<1x3x32xf32>
    %cst_55 = arith.constant 0.000000e+00 : f32
    %97 = vector.broadcast %cst_55 : f32 to vector<1x3x32xf32>
    %98 = tpu.concatenate %97, %96 in 2 : vector<1x3x32xf32>, vector<1x3x32xf32> -> vector<1x3x64xf32>
    %c176 = arith.constant 176 : index
    %c0_56 = arith.constant 0 : index
    %99 = vector.load %arg4[%c176, %c0_56] : memref<384x128xf32, #tpu.memory_space<vmem>>, vector<64x32xf32>
    %c176_57 = arith.constant 176 : index
    %c64_58 = arith.constant 64 : index
    %100 = vector.load %arg4[%c176_57, %c64_58] : memref<384x128xf32, #tpu.memory_space<vmem>>, vector<1x32xf32>
    %101 = vector.shape_cast %98 : vector<1x3x64xf32> to vector<3x64xf32>
    %cst_59 = arith.constant dense<0.000000e+00> : vector<3x32xf32>
    %102 = tpu.matmul %101, %99, %cst_59 {dimension_numbers = #tpu.dot_dimension_numbers<[1], [0], [0], [1], [0, 0, 1, 1], [], []>} : vector<3x64xf32>, vector<64x32xf32>, vector<3x32xf32> -> vector<3x32xf32>
    %103 = vector.broadcast %100 : vector<1x32xf32> to vector<3x32xf32>
    %104 = arith.addf %102, %103 : vector<3x32xf32>
    %105 = vector.shape_cast %104 : vector<3x32xf32> to vector<1x3x32xf32>
    %cst_60 = arith.constant 0.000000e+00 : f32
    %106 = vector.broadcast %cst_60 : f32 to vector<1x3x32xf32>
    %107 = arith.maximumf %105, %106 : vector<1x3x32xf32>
    %cst_61 = arith.constant 0.000000e+00 : f32
    %108 = vector.broadcast %cst_61 : f32 to vector<1x3x32xf32>
    %109 = tpu.concatenate %108, %107 in 2 : vector<1x3x32xf32>, vector<1x3x32xf32> -> vector<1x3x64xf32>
    %c176_62 = arith.constant 176 : index
    %c32_63 = arith.constant 32 : index
    %110 = vector.load %arg4[%c176_62, %c32_63] : memref<384x128xf32, #tpu.memory_space<vmem>>, vector<64x32xf32>
    %c176_64 = arith.constant 176 : index
    %c96_65 = arith.constant 96 : index
    %111 = vector.load %arg4[%c176_64, %c96_65] : memref<384x128xf32, #tpu.memory_space<vmem>>, vector<1x32xf32>
    %112 = vector.shape_cast %109 : vector<1x3x64xf32> to vector<3x64xf32>
    %cst_66 = arith.constant dense<0.000000e+00> : vector<3x32xf32>
    %113 = tpu.matmul %112, %110, %cst_66 {dimension_numbers = #tpu.dot_dimension_numbers<[1], [0], [0], [1], [0, 0, 1, 1], [], []>} : vector<3x64xf32>, vector<64x32xf32>, vector<3x32xf32> -> vector<3x32xf32>
    %114 = vector.broadcast %111 : vector<1x32xf32> to vector<3x32xf32>
    %115 = arith.addf %113, %114 : vector<3x32xf32>
    %116 = vector.shape_cast %115 : vector<3x32xf32> to vector<1x3x32xf32>
    %cst_67 = arith.constant 0.000000e+00 : f32
    %117 = vector.broadcast %cst_67 : f32 to vector<1x3x32xf32>
    %118 = arith.maximumf %116, %117 : vector<1x3x32xf32>
    %119 = arith.addf %118, %96 : vector<1x3x32xf32>
    %cst_68 = arith.constant 0.000000e+00 : f32
    %120 = vector.broadcast %cst_68 : f32 to vector<1x3x32xf32>
    %121 = arith.maximumf %119, %120 : vector<1x3x32xf32>
    %c16 = arith.constant 16 : index
    %c0_69 = arith.constant 0 : index
    %122 = vector.load %arg4[%c16, %c0_69] : memref<384x128xf32, #tpu.memory_space<vmem>>, vector<32x24xf32>
    %c16_70 = arith.constant 16 : index
    %c24 = arith.constant 24 : index
    %123 = vector.load %arg4[%c16_70, %c24] : memref<384x128xf32, #tpu.memory_space<vmem>>, vector<1x24xf32>
    %124 = vector.shape_cast %121 : vector<1x3x32xf32> to vector<3x32xf32>
    %cst_71 = arith.constant dense<0.000000e+00> : vector<3x24xf32>
    %125 = tpu.matmul %124, %122, %cst_71 {dimension_numbers = #tpu.dot_dimension_numbers<[1], [0], [0], [1], [0, 0, 1, 1], [], []>} : vector<3x32xf32>, vector<32x24xf32>, vector<3x24xf32> -> vector<3x24xf32>
    %126 = vector.broadcast %123 : vector<1x24xf32> to vector<3x24xf32>
    %127 = arith.addf %125, %126 : vector<3x24xf32>
    %128 = vector.shape_cast %127 : vector<3x24xf32> to vector<1x3x24xf32>
    %c16_72 = arith.constant 16 : index
    %c80 = arith.constant 80 : index
    %129 = vector.load %arg4[%c16_72, %c80] : memref<384x128xf32, #tpu.memory_space<vmem>>, vector<1x24xf32>
    %130 = vector.shape_cast %129 : vector<1x24xf32> to vector<1x1x24xf32>
    %131 = vector.broadcast %130 : vector<1x1x24xf32> to vector<1x16x24xf32>
    %c0_73 = arith.constant 0 : index
    %c0_74 = arith.constant 0 : index
    %c0_75 = arith.constant 0 : index
    %132 = vector.load %arg9[%c0_73, %c0_74, %c0_75] : memref<1x16x24xf32, #tpu.memory_space<vmem>>, vector<1x16x24xf32>
    tpu.vector_store %arg9[%c0_73, %c0_74, %c0_75], %131 {strides = array<i32>} : memref<1x16x24xf32, #tpu.memory_space<vmem>>, vector<1x16x24xf32>,
    %c0_76 = arith.constant 0 : index
    %c0_77 = arith.constant 0 : index
    %c0_78 = arith.constant 0 : index
    %133 = vector.load %arg9[%c0_76, %c0_77, %c0_78] : memref<1x16x24xf32, #tpu.memory_space<vmem>>, vector<1x3x24xf32>
    tpu.vector_store %arg9[%c0_76, %c0_77, %c0_78], %128 {strides = array<i32>} : memref<1x16x24xf32, #tpu.memory_space<vmem>>, vector<1x3x24xf32>,
    %c1_i32_79 = arith.constant 1 : i32
    %134 = arith.muli %arg0, %c1_i32_79 : i32
    %c0_i32_80 = arith.constant 0 : i32
    %135 = arith.addi %134, %c0_i32_80 : i32
    %136 = arith.index_cast %135 : i32 to index
    %c0_81 = arith.constant 0 : index
    %137 = memref.load %arg2[%136, %c0_81] : memref<2x16xi32, #tpu.memory_space<smem>>
    %c0_82 = arith.constant 0 : index
    %138 = arith.index_cast %137 : i32 to index
    %c0_83 = arith.constant 0 : index
    %139 = vector.load %arg9[%c0_82, %138, %c0_83] : memref<1x16x24xf32, #tpu.memory_space<vmem>>, vector<1x1x24xf32>
    %140 = vector.shape_cast %139 : vector<1x1x24xf32> to vector<1x24xf32>
    %c0_84 = arith.constant 0 : index
    %c0_85 = arith.constant 0 : index
    %c0_86 = arith.constant 0 : index
    %141 = vector.load %arg10[%c0_84, %c0_85, %c0_86] : memref<1x16x24xf32, #tpu.memory_space<vmem>>, vector<1x1x24xf32>
    %142 = vector.shape_cast %141 : vector<1x1x24xf32> to vector<1x24xf32>
    %143 = vector.shape_cast %140 : vector<1x24xf32> to vector<1x1x24xf32>
    tpu.vector_store %arg10[%c0_84, %c0_85, %c0_86], %143 {strides = array<i32>} : memref<1x16x24xf32, #tpu.memory_space<vmem>>, vector<1x1x24xf32>,
    %144 = arith.index_cast %135 : i32 to index
    %c1_87 = arith.constant 1 : index
    %145 = memref.load %arg2[%144, %c1_87] : memref<2x16xi32, #tpu.memory_space<smem>>
    %c0_88 = arith.constant 0 : index
    %146 = arith.index_cast %145 : i32 to index
    %c0_89 = arith.constant 0 : index
    %147 = vector.load %arg9[%c0_88, %146, %c0_89] : memref<1x16x24xf32, #tpu.memory_space<vmem>>, vector<1x1x24xf32>
    %148 = vector.shape_cast %147 : vector<1x1x24xf32> to vector<1x24xf32>
    %c0_90 = arith.constant 0 : index
    %c1_91 = arith.constant 1 : index
    %c0_92 = arith.constant 0 : index
    %149 = vector.load %arg10[%c0_90, %c1_91, %c0_92] : memref<1x16x24xf32, #tpu.memory_space<vmem>>, vector<1x1x24xf32>
    %150 = vector.shape_cast %149 : vector<1x1x24xf32> to vector<1x24xf32>
    %151 = vector.shape_cast %148 : vector<1x24xf32> to vector<1x1x24xf32>
    tpu.vector_store %arg10[%c0_90, %c1_91, %c0_92], %151 {strides = array<i32>} : memref<1x16x24xf32, #tpu.memory_space<vmem>>, vector<1x1x24xf32>,
    %152 = arith.index_cast %135 : i32 to index
    %c2_93 = arith.constant 2 : index
    %153 = memref.load %arg2[%152, %c2_93] : memref<2x16xi32, #tpu.memory_space<smem>>
    %c0_94 = arith.constant 0 : index
    %154 = arith.index_cast %153 : i32 to index
    %c0_95 = arith.constant 0 : index
    %155 = vector.load %arg9[%c0_94, %154, %c0_95] : memref<1x16x24xf32, #tpu.memory_space<vmem>>, vector<1x1x24xf32>
    %156 = vector.shape_cast %155 : vector<1x1x24xf32> to vector<1x24xf32>
    %c0_96 = arith.constant 0 : index
    %c2_97 = arith.constant 2 : index
    %c0_98 = arith.constant 0 : index
    %157 = vector.load %arg10[%c0_96, %c2_97, %c0_98] : memref<1x16x24xf32, #tpu.memory_space<vmem>>, vector<1x1x24xf32>
    %158 = vector.shape_cast %157 : vector<1x1x24xf32> to vector<1x24xf32>
    %159 = vector.shape_cast %156 : vector<1x24xf32> to vector<1x1x24xf32>
    tpu.vector_store %arg10[%c0_96, %c2_97, %c0_98], %159 {strides = array<i32>} : memref<1x16x24xf32, #tpu.memory_space<vmem>>, vector<1x1x24xf32>,
    %160 = arith.index_cast %135 : i32 to index
    %c3 = arith.constant 3 : index
    %161 = memref.load %arg2[%160, %c3] : memref<2x16xi32, #tpu.memory_space<smem>>
    %c0_99 = arith.constant 0 : index
    %162 = arith.index_cast %161 : i32 to index
    %c0_100 = arith.constant 0 : index
    %163 = vector.load %arg9[%c0_99, %162, %c0_100] : memref<1x16x24xf32, #tpu.memory_space<vmem>>, vector<1x1x24xf32>
    %164 = vector.shape_cast %163 : vector<1x1x24xf32> to vector<1x24xf32>
    %c0_101 = arith.constant 0 : index
    %c3_102 = arith.constant 3 : index
    %c0_103 = arith.constant 0 : index
    %165 = vector.load %arg10[%c0_101, %c3_102, %c0_103] : memref<1x16x24xf32, #tpu.memory_space<vmem>>, vector<1x1x24xf32>
    %166 = vector.shape_cast %165 : vector<1x1x24xf32> to vector<1x24xf32>
    %167 = vector.shape_cast %164 : vector<1x24xf32> to vector<1x1x24xf32>
    tpu.vector_store %arg10[%c0_101, %c3_102, %c0_103], %167 {strides = array<i32>} : memref<1x16x24xf32, #tpu.memory_space<vmem>>, vector<1x1x24xf32>,
    %168 = arith.index_cast %135 : i32 to index
    %c4 = arith.constant 4 : index
    %169 = memref.load %arg2[%168, %c4] : memref<2x16xi32, #tpu.memory_space<smem>>
    %c0_104 = arith.constant 0 : index
    %170 = arith.index_cast %169 : i32 to index
    %c0_105 = arith.constant 0 : index
    %171 = vector.load %arg9[%c0_104, %170, %c0_105] : memref<1x16x24xf32, #tpu.memory_space<vmem>>, vector<1x1x24xf32>
    %172 = vector.shape_cast %171 : vector<1x1x24xf32> to vector<1x24xf32>
    %c0_106 = arith.constant 0 : index
    %c4_107 = arith.constant 4 : index
    %c0_108 = arith.constant 0 : index
    %173 = vector.load %arg10[%c0_106, %c4_107, %c0_108] : memref<1x16x24xf32, #tpu.memory_space<vmem>>, vector<1x1x24xf32>
    %174 = vector.shape_cast %173 : vector<1x1x24xf32> to vector<1x24xf32>
    %175 = vector.shape_cast %172 : vector<1x24xf32> to vector<1x1x24xf32>
    tpu.vector_store %arg10[%c0_106, %c4_107, %c0_108], %175 {strides = array<i32>} : memref<1x16x24xf32, #tpu.memory_space<vmem>>, vector<1x1x24xf32>,
    %176 = arith.index_cast %135 : i32 to index
    %c5 = arith.constant 5 : index
    %177 = memref.load %arg2[%176, %c5] : memref<2x16xi32, #tpu.memory_space<smem>>
    %c0_109 = arith.constant 0 : index
    %178 = arith.index_cast %177 : i32 to index
    %c0_110 = arith.constant 0 : index
    %179 = vector.load %arg9[%c0_109, %178, %c0_110] : memref<1x16x24xf32, #tpu.memory_space<vmem>>, vector<1x1x24xf32>
    %180 = vector.shape_cast %179 : vector<1x1x24xf32> to vector<1x24xf32>
    %c0_111 = arith.constant 0 : index
    %c5_112 = arith.constant 5 : index
    %c0_113 = arith.constant 0 : index
    %181 = vector.load %arg10[%c0_111, %c5_112, %c0_113] : memref<1x16x24xf32, #tpu.memory_space<vmem>>, vector<1x1x24xf32>
    %182 = vector.shape_cast %181 : vector<1x1x24xf32> to vector<1x24xf32>
    %183 = vector.shape_cast %180 : vector<1x24xf32> to vector<1x1x24xf32>
    tpu.vector_store %arg10[%c0_111, %c5_112, %c0_113], %183 {strides = array<i32>} : memref<1x16x24xf32, #tpu.memory_space<vmem>>, vector<1x1x24xf32>,
    %184 = arith.index_cast %135 : i32 to index
    %c6 = arith.constant 6 : index
    %185 = memref.load %arg2[%184, %c6] : memref<2x16xi32, #tpu.memory_space<smem>>
    %c0_114 = arith.constant 0 : index
    %186 = arith.index_cast %185 : i32 to index
    %c0_115 = arith.constant 0 : index
    %187 = vector.load %arg9[%c0_114, %186, %c0_115] : memref<1x16x24xf32, #tpu.memory_space<vmem>>, vector<1x1x24xf32>
    %188 = vector.shape_cast %187 : vector<1x1x24xf32> to vector<1x24xf32>
    %c0_116 = arith.constant 0 : index
    %c6_117 = arith.constant 6 : index
    %c0_118 = arith.constant 0 : index
    %189 = vector.load %arg10[%c0_116, %c6_117, %c0_118] : memref<1x16x24xf32, #tpu.memory_space<vmem>>, vector<1x1x24xf32>
    %190 = vector.shape_cast %189 : vector<1x1x24xf32> to vector<1x24xf32>
    %191 = vector.shape_cast %188 : vector<1x24xf32> to vector<1x1x24xf32>
    tpu.vector_store %arg10[%c0_116, %c6_117, %c0_118], %191 {strides = array<i32>} : memref<1x16x24xf32, #tpu.memory_space<vmem>>, vector<1x1x24xf32>,
    %192 = arith.index_cast %135 : i32 to index
    %c7 = arith.constant 7 : index
    %193 = memref.load %arg2[%192, %c7] : memref<2x16xi32, #tpu.memory_space<smem>>
    %c0_119 = arith.constant 0 : index
    %194 = arith.index_cast %193 : i32 to index
    %c0_120 = arith.constant 0 : index
    %195 = vector.load %arg9[%c0_119, %194, %c0_120] : memref<1x16x24xf32, #tpu.memory_space<vmem>>, vector<1x1x24xf32>
    %196 = vector.shape_cast %195 : vector<1x1x24xf32> to vector<1x24xf32>
    %c0_121 = arith.constant 0 : index
    %c7_122 = arith.constant 7 : index
    %c0_123 = arith.constant 0 : index
    %197 = vector.load %arg10[%c0_121, %c7_122, %c0_123] : memref<1x16x24xf32, #tpu.memory_space<vmem>>, vector<1x1x24xf32>
    %198 = vector.shape_cast %197 : vector<1x1x24xf32> to vector<1x24xf32>
    %199 = vector.shape_cast %196 : vector<1x24xf32> to vector<1x1x24xf32>
    tpu.vector_store %arg10[%c0_121, %c7_122, %c0_123], %199 {strides = array<i32>} : memref<1x16x24xf32, #tpu.memory_space<vmem>>, vector<1x1x24xf32>,
    %200 = arith.index_cast %135 : i32 to index
    %c8 = arith.constant 8 : index
    %201 = memref.load %arg2[%200, %c8] : memref<2x16xi32, #tpu.memory_space<smem>>
    %c0_124 = arith.constant 0 : index
    %202 = arith.index_cast %201 : i32 to index
    %c0_125 = arith.constant 0 : index
    %203 = vector.load %arg9[%c0_124, %202, %c0_125] : memref<1x16x24xf32, #tpu.memory_space<vmem>>, vector<1x1x24xf32>
    %204 = vector.shape_cast %203 : vector<1x1x24xf32> to vector<1x24xf32>
    %c0_126 = arith.constant 0 : index
    %c8_127 = arith.constant 8 : index
    %c0_128 = arith.constant 0 : index
    %205 = vector.load %arg10[%c0_126, %c8_127, %c0_128] : memref<1x16x24xf32, #tpu.memory_space<vmem>>, vector<1x1x24xf32>
    %206 = vector.shape_cast %205 : vector<1x1x24xf32> to vector<1x24xf32>
    %207 = vector.shape_cast %204 : vector<1x24xf32> to vector<1x1x24xf32>
    tpu.vector_store %arg10[%c0_126, %c8_127, %c0_128], %207 {strides = array<i32>} : memref<1x16x24xf32, #tpu.memory_space<vmem>>, vector<1x1x24xf32>,
    %208 = arith.index_cast %135 : i32 to index
    %c9 = arith.constant 9 : index
    %209 = memref.load %arg2[%208, %c9] : memref<2x16xi32, #tpu.memory_space<smem>>
    %c0_129 = arith.constant 0 : index
    %210 = arith.index_cast %209 : i32 to index
    %c0_130 = arith.constant 0 : index
    %211 = vector.load %arg9[%c0_129, %210, %c0_130] : memref<1x16x24xf32, #tpu.memory_space<vmem>>, vector<1x1x24xf32>
    %212 = vector.shape_cast %211 : vector<1x1x24xf32> to vector<1x24xf32>
    %c0_131 = arith.constant 0 : index
    %c9_132 = arith.constant 9 : index
    %c0_133 = arith.constant 0 : index
    %213 = vector.load %arg10[%c0_131, %c9_132, %c0_133] : memref<1x16x24xf32, #tpu.memory_space<vmem>>, vector<1x1x24xf32>
    %214 = vector.shape_cast %213 : vector<1x1x24xf32> to vector<1x24xf32>
    %215 = vector.shape_cast %212 : vector<1x24xf32> to vector<1x1x24xf32>
    tpu.vector_store %arg10[%c0_131, %c9_132, %c0_133], %215 {strides = array<i32>} : memref<1x16x24xf32, #tpu.memory_space<vmem>>, vector<1x1x24xf32>,
    %216 = arith.index_cast %135 : i32 to index
    %c10 = arith.constant 10 : index
    %217 = memref.load %arg2[%216, %c10] : memref<2x16xi32, #tpu.memory_space<smem>>
    %c0_134 = arith.constant 0 : index
    %218 = arith.index_cast %217 : i32 to index
    %c0_135 = arith.constant 0 : index
    %219 = vector.load %arg9[%c0_134, %218, %c0_135] : memref<1x16x24xf32, #tpu.memory_space<vmem>>, vector<1x1x24xf32>
    %220 = vector.shape_cast %219 : vector<1x1x24xf32> to vector<1x24xf32>
    %c0_136 = arith.constant 0 : index
    %c10_137 = arith.constant 10 : index
    %c0_138 = arith.constant 0 : index
    %221 = vector.load %arg10[%c0_136, %c10_137, %c0_138] : memref<1x16x24xf32, #tpu.memory_space<vmem>>, vector<1x1x24xf32>
    %222 = vector.shape_cast %221 : vector<1x1x24xf32> to vector<1x24xf32>
    %223 = vector.shape_cast %220 : vector<1x24xf32> to vector<1x1x24xf32>
    tpu.vector_store %arg10[%c0_136, %c10_137, %c0_138], %223 {strides = array<i32>} : memref<1x16x24xf32, #tpu.memory_space<vmem>>, vector<1x1x24xf32>,
    %224 = arith.index_cast %135 : i32 to index
    %c11 = arith.constant 11 : index
    %225 = memref.load %arg2[%224, %c11] : memref<2x16xi32, #tpu.memory_space<smem>>
    %c0_139 = arith.constant 0 : index
    %226 = arith.index_cast %225 : i32 to index
    %c0_140 = arith.constant 0 : index
    %227 = vector.load %arg9[%c0_139, %226, %c0_140] : memref<1x16x24xf32, #tpu.memory_space<vmem>>, vector<1x1x24xf32>
    %228 = vector.shape_cast %227 : vector<1x1x24xf32> to vector<1x24xf32>
    %c0_141 = arith.constant 0 : index
    %c11_142 = arith.constant 11 : index
    %c0_143 = arith.constant 0 : index
    %229 = vector.load %arg10[%c0_141, %c11_142, %c0_143] : memref<1x16x24xf32, #tpu.memory_space<vmem>>, vector<1x1x24xf32>
    %230 = vector.shape_cast %229 : vector<1x1x24xf32> to vector<1x24xf32>
    %231 = vector.shape_cast %228 : vector<1x24xf32> to vector<1x1x24xf32>
    tpu.vector_store %arg10[%c0_141, %c11_142, %c0_143], %231 {strides = array<i32>} : memref<1x16x24xf32, #tpu.memory_space<vmem>>, vector<1x1x24xf32>,
    %232 = arith.index_cast %135 : i32 to index
    %c12 = arith.constant 12 : index
    %233 = memref.load %arg2[%232, %c12] : memref<2x16xi32, #tpu.memory_space<smem>>
    %c0_144 = arith.constant 0 : index
    %234 = arith.index_cast %233 : i32 to index
    %c0_145 = arith.constant 0 : index
    %235 = vector.load %arg9[%c0_144, %234, %c0_145] : memref<1x16x24xf32, #tpu.memory_space<vmem>>, vector<1x1x24xf32>
    %236 = vector.shape_cast %235 : vector<1x1x24xf32> to vector<1x24xf32>
    %c0_146 = arith.constant 0 : index
    %c12_147 = arith.constant 12 : index
    %c0_148 = arith.constant 0 : index
    %237 = vector.load %arg10[%c0_146, %c12_147, %c0_148] : memref<1x16x24xf32, #tpu.memory_space<vmem>>, vector<1x1x24xf32>
    %238 = vector.shape_cast %237 : vector<1x1x24xf32> to vector<1x24xf32>
    %239 = vector.shape_cast %236 : vector<1x24xf32> to vector<1x1x24xf32>
    tpu.vector_store %arg10[%c0_146, %c12_147, %c0_148], %239 {strides = array<i32>} : memref<1x16x24xf32, #tpu.memory_space<vmem>>, vector<1x1x24xf32>,
    %240 = arith.index_cast %135 : i32 to index
    %c13 = arith.constant 13 : index
    %241 = memref.load %arg2[%240, %c13] : memref<2x16xi32, #tpu.memory_space<smem>>
    %c0_149 = arith.constant 0 : index
    %242 = arith.index_cast %241 : i32 to index
    %c0_150 = arith.constant 0 : index
    %243 = vector.load %arg9[%c0_149, %242, %c0_150] : memref<1x16x24xf32, #tpu.memory_space<vmem>>, vector<1x1x24xf32>
    %244 = vector.shape_cast %243 : vector<1x1x24xf32> to vector<1x24xf32>
    %c0_151 = arith.constant 0 : index
    %c13_152 = arith.constant 13 : index
    %c0_153 = arith.constant 0 : index
    %245 = vector.load %arg10[%c0_151, %c13_152, %c0_153] : memref<1x16x24xf32, #tpu.memory_space<vmem>>, vector<1x1x24xf32>
    %246 = vector.shape_cast %245 : vector<1x1x24xf32> to vector<1x24xf32>
    %247 = vector.shape_cast %244 : vector<1x24xf32> to vector<1x1x24xf32>
    tpu.vector_store %arg10[%c0_151, %c13_152, %c0_153], %247 {strides = array<i32>} : memref<1x16x24xf32, #tpu.memory_space<vmem>>, vector<1x1x24xf32>,
    %248 = arith.index_cast %135 : i32 to index
    %c14 = arith.constant 14 : index
    %249 = memref.load %arg2[%248, %c14] : memref<2x16xi32, #tpu.memory_space<smem>>
    %c0_154 = arith.constant 0 : index
    %250 = arith.index_cast %249 : i32 to index
    %c0_155 = arith.constant 0 : index
    %251 = vector.load %arg9[%c0_154, %250, %c0_155] : memref<1x16x24xf32, #tpu.memory_space<vmem>>, vector<1x1x24xf32>
    %252 = vector.shape_cast %251 : vector<1x1x24xf32> to vector<1x24xf32>
    %c0_156 = arith.constant 0 : index
    %c14_157 = arith.constant 14 : index
    %c0_158 = arith.constant 0 : index
    %253 = vector.load %arg10[%c0_156, %c14_157, %c0_158] : memref<1x16x24xf32, #tpu.memory_space<vmem>>, vector<1x1x24xf32>
    %254 = vector.shape_cast %253 : vector<1x1x24xf32> to vector<1x24xf32>
    %255 = vector.shape_cast %252 : vector<1x24xf32> to vector<1x1x24xf32>
    tpu.vector_store %arg10[%c0_156, %c14_157, %c0_158], %255 {strides = array<i32>} : memref<1x16x24xf32, #tpu.memory_space<vmem>>, vector<1x1x24xf32>,
    %256 = arith.index_cast %135 : i32 to index
    %c15 = arith.constant 15 : index
    %257 = memref.load %arg2[%256, %c15] : memref<2x16xi32, #tpu.memory_space<smem>>
    %c0_159 = arith.constant 0 : index
    %258 = arith.index_cast %257 : i32 to index
    %c0_160 = arith.constant 0 : index
    %259 = vector.load %arg9[%c0_159, %258, %c0_160] : memref<1x16x24xf32, #tpu.memory_space<vmem>>, vector<1x1x24xf32>
    %260 = vector.shape_cast %259 : vector<1x1x24xf32> to vector<1x24xf32>
    %c0_161 = arith.constant 0 : index
    %c15_162 = arith.constant 15 : index
    %c0_163 = arith.constant 0 : index
    %261 = vector.load %arg10[%c0_161, %c15_162, %c0_163] : memref<1x16x24xf32, #tpu.memory_space<vmem>>, vector<1x1x24xf32>
    %262 = vector.shape_cast %261 : vector<1x1x24xf32> to vector<1x24xf32>
    %263 = vector.shape_cast %260 : vector<1x24xf32> to vector<1x1x24xf32>
    tpu.vector_store %arg10[%c0_161, %c15_162, %c0_163], %263 {strides = array<i32>} : memref<1x16x24xf32, #tpu.memory_space<vmem>>, vector<1x1x24xf32>,
    %c0_164 = arith.constant 0 : index
    %c0_165 = arith.constant 0 : index
    %c0_166 = arith.constant 0 : index
    %264 = vector.load %arg10[%c0_164, %c0_165, %c0_166] : memref<1x16x24xf32, #tpu.memory_space<vmem>>, vector<1x16x24xf32>
    %c0_167 = arith.constant 0 : index
    %c96_168 = arith.constant 96 : index
    %265 = vector.load %arg4[%c0_167, %c96_168] : memref<384x128xf32, #tpu.memory_space<vmem>>, vector<16x24xf32>
    %266 = vector.shape_cast %265 : vector<16x24xf32> to vector<1x16x24xf32>
    %267 = arith.addf %264, %266 : vector<1x16x24xf32>
    %cst_169 = arith.constant 0.000000e+00 : f32
    %268 = vector.broadcast %cst_169 : f32 to vector<1x1x24xf32>
    %269 = vector.extract_strided_slice %267 {offsets = [0, 0, 0], sizes = [1, 15, 24], strides = [1, 1, 1]} : vector<1x16x24xf32> to vector<1x15x24xf32>
    %270 = tpu.concatenate %268, %269 in 1 : vector<1x1x24xf32>, vector<1x15x24xf32> -> vector<1x16x24xf32>
    %271 = tpu.concatenate %270, %267 in 2 : vector<1x16x24xf32>, vector<1x16x24xf32> -> vector<1x16x48xf32>
    %c240 = arith.constant 240 : index
    %c0_170 = arith.constant 0 : index
    %272 = vector.load %arg4[%c240, %c0_170] : memref<384x128xf32, #tpu.memory_space<vmem>>, vector<48x24xf32>
    %c240_171 = arith.constant 240 : index
    %c48_172 = arith.constant 48 : index
    %273 = vector.load %arg4[%c240_171, %c48_172] : memref<384x128xf32, #tpu.memory_space<vmem>>, vector<1x24xf32>
    %274 = vector.shape_cast %271 : vector<1x16x48xf32> to vector<16x48xf32>
    %cst_173 = arith.constant dense<0.000000e+00> : vector<16x24xf32>
    %275 = tpu.matmul %274, %272, %cst_173 {dimension_numbers = #tpu.dot_dimension_numbers<[1], [0], [0], [1], [0, 0, 1, 1], [], []>} : vector<16x48xf32>, vector<48x24xf32>, vector<16x24xf32> -> vector<16x24xf32>
    %276 = vector.broadcast %273 : vector<1x24xf32> to vector<16x24xf32>
    %277 = arith.addf %275, %276 : vector<16x24xf32>
    %278 = vector.shape_cast %277 : vector<16x24xf32> to vector<1x16x24xf32>
    %cst_174 = arith.constant 0.000000e+00 : f32
    %279 = vector.broadcast %cst_174 : f32 to vector<1x16x24xf32>
    %280 = arith.maximumf %278, %279 : vector<1x16x24xf32>
    %cst_175 = arith.constant 0.000000e+00 : f32
    %281 = vector.broadcast %cst_175 : f32 to vector<1x1x24xf32>
    %282 = vector.extract_strided_slice %280 {offsets = [0, 0, 0], sizes = [1, 15, 24], strides = [1, 1, 1]} : vector<1x16x24xf32> to vector<1x15x24xf32>
    %283 = tpu.concatenate %281, %282 in 1 : vector<1x1x24xf32>, vector<1x15x24xf32> -> vector<1x16x24xf32>
    %284 = tpu.concatenate %283, %280 in 2 : vector<1x16x24xf32>, vector<1x16x24xf32> -> vector<1x16x48xf32>
    %c240_176 = arith.constant 240 : index
    %c24_177 = arith.constant 24 : index
    %285 = vector.load %arg4[%c240_176, %c24_177] : memref<384x128xf32, #tpu.memory_space<vmem>>, vector<48x24xf32>
    %c240_178 = arith.constant 240 : index
    %c72 = arith.constant 72 : index
    %286 = vector.load %arg4[%c240_178, %c72] : memref<384x128xf32, #tpu.memory_space<vmem>>, vector<1x24xf32>
    %287 = vector.shape_cast %284 : vector<1x16x48xf32> to vector<16x48xf32>
    %cst_179 = arith.constant dense<0.000000e+00> : vector<16x24xf32>
    %288 = tpu.matmul %287, %285, %cst_179 {dimension_numbers = #tpu.dot_dimension_numbers<[1], [0], [0], [1], [0, 0, 1, 1], [], []>} : vector<16x48xf32>, vector<48x24xf32>, vector<16x24xf32> -> vector<16x24xf32>
    %289 = vector.broadcast %286 : vector<1x24xf32> to vector<16x24xf32>
    %290 = arith.addf %288, %289 : vector<16x24xf32>
    %291 = vector.shape_cast %290 : vector<16x24xf32> to vector<1x16x24xf32>
    %cst_180 = arith.constant 0.000000e+00 : f32
    %292 = vector.broadcast %cst_180 : f32 to vector<1x16x24xf32>
    %293 = arith.maximumf %291, %292 : vector<1x16x24xf32>
    %294 = arith.addf %293, %267 : vector<1x16x24xf32>
    %cst_181 = arith.constant 0.000000e+00 : f32
    %295 = vector.broadcast %cst_181 : f32 to vector<1x16x24xf32>
    %296 = arith.maximumf %294, %295 : vector<1x16x24xf32>
    %cst_182 = arith.constant 0.000000e+00 : f32
    %297 = vector.broadcast %cst_182 : f32 to vector<1x2x24xf32>
    %298 = vector.extract_strided_slice %296 {offsets = [0, 0, 0], sizes = [1, 14, 24], strides = [1, 1, 1]} : vector<1x16x24xf32> to vector<1x14x24xf32>
    %299 = tpu.concatenate %297, %298 in 1 : vector<1x2x24xf32>, vector<1x14x24xf32> -> vector<1x16x24xf32>
    %300 = tpu.concatenate %299, %296 in 2 : vector<1x16x24xf32>, vector<1x16x24xf32> -> vector<1x16x48xf32>
    %c288 = arith.constant 288 : index
    %c0_183 = arith.constant 0 : index
    %301 = vector.load %arg4[%c288, %c0_183] : memref<384x128xf32, #tpu.memory_space<vmem>>, vector<48x24xf32>
    %c288_184 = arith.constant 288 : index
    %c48_185 = arith.constant 48 : index
    %302 = vector.load %arg4[%c288_184, %c48_185] : memref<384x128xf32, #tpu.memory_space<vmem>>, vector<1x24xf32>
    %303 = vector.shape_cast %300 : vector<1x16x48xf32> to vector<16x48xf32>
    %cst_186 = arith.constant dense<0.000000e+00> : vector<16x24xf32>
    %304 = tpu.matmul %303, %301, %cst_186 {dimension_numbers = #tpu.dot_dimension_numbers<[1], [0], [0], [1], [0, 0, 1, 1], [], []>} : vector<16x48xf32>, vector<48x24xf32>, vector<16x24xf32> -> vector<16x24xf32>
    %305 = vector.broadcast %302 : vector<1x24xf32> to vector<16x24xf32>
    %306 = arith.addf %304, %305 : vector<16x24xf32>
    %307 = vector.shape_cast %306 : vector<16x24xf32> to vector<1x16x24xf32>
    %cst_187 = arith.constant 0.000000e+00 : f32
    %308 = vector.broadcast %cst_187 : f32 to vector<1x16x24xf32>
    %309 = arith.maximumf %307, %308 : vector<1x16x24xf32>
    %cst_188 = arith.constant 0.000000e+00 : f32
    %310 = vector.broadcast %cst_188 : f32 to vector<1x2x24xf32>
    %311 = vector.extract_strided_slice %309 {offsets = [0, 0, 0], sizes = [1, 14, 24], strides = [1, 1, 1]} : vector<1x16x24xf32> to vector<1x14x24xf32>
    %312 = tpu.concatenate %310, %311 in 1 : vector<1x2x24xf32>, vector<1x14x24xf32> -> vector<1x16x24xf32>
    %313 = tpu.concatenate %312, %309 in 2 : vector<1x16x24xf32>, vector<1x16x24xf32> -> vector<1x16x48xf32>
    %c288_189 = arith.constant 288 : index
    %c24_190 = arith.constant 24 : index
    %314 = vector.load %arg4[%c288_189, %c24_190] : memref<384x128xf32, #tpu.memory_space<vmem>>, vector<48x24xf32>
    %c288_191 = arith.constant 288 : index
    %c72_192 = arith.constant 72 : index
    %315 = vector.load %arg4[%c288_191, %c72_192] : memref<384x128xf32, #tpu.memory_space<vmem>>, vector<1x24xf32>
    %316 = vector.shape_cast %313 : vector<1x16x48xf32> to vector<16x48xf32>
    %cst_193 = arith.constant dense<0.000000e+00> : vector<16x24xf32>
    %317 = tpu.matmul %316, %314, %cst_193 {dimension_numbers = #tpu.dot_dimension_numbers<[1], [0], [0], [1], [0, 0, 1, 1], [], []>} : vector<16x48xf32>, vector<48x24xf32>, vector<16x24xf32> -> vector<16x24xf32>
    %318 = vector.broadcast %315 : vector<1x24xf32> to vector<16x24xf32>
    %319 = arith.addf %317, %318 : vector<16x24xf32>
    %320 = vector.shape_cast %319 : vector<16x24xf32> to vector<1x16x24xf32>
    %cst_194 = arith.constant 0.000000e+00 : f32
    %321 = vector.broadcast %cst_194 : f32 to vector<1x16x24xf32>
    %322 = arith.maximumf %320, %321 : vector<1x16x24xf32>
    %323 = arith.addf %322, %296 : vector<1x16x24xf32>
    %cst_195 = arith.constant 0.000000e+00 : f32
    %324 = vector.broadcast %cst_195 : f32 to vector<1x16x24xf32>
    %325 = arith.maximumf %323, %324 : vector<1x16x24xf32>
    %cst_196 = arith.constant 0.000000e+00 : f32
    %326 = vector.broadcast %cst_196 : f32 to vector<1x4x24xf32>
    %327 = vector.extract_strided_slice %325 {offsets = [0, 0, 0], sizes = [1, 12, 24], strides = [1, 1, 1]} : vector<1x16x24xf32> to vector<1x12x24xf32>
    %328 = tpu.concatenate %326, %327 in 1 : vector<1x4x24xf32>, vector<1x12x24xf32> -> vector<1x16x24xf32>
    %329 = tpu.concatenate %328, %325 in 2 : vector<1x16x24xf32>, vector<1x16x24xf32> -> vector<1x16x48xf32>
    %c336 = arith.constant 336 : index
    %c0_197 = arith.constant 0 : index
    %330 = vector.load %arg4[%c336, %c0_197] : memref<384x128xf32, #tpu.memory_space<vmem>>, vector<48x24xf32>
    %c336_198 = arith.constant 336 : index
    %c48_199 = arith.constant 48 : index
    %331 = vector.load %arg4[%c336_198, %c48_199] : memref<384x128xf32, #tpu.memory_space<vmem>>, vector<1x24xf32>
    %332 = vector.shape_cast %329 : vector<1x16x48xf32> to vector<16x48xf32>
    %cst_200 = arith.constant dense<0.000000e+00> : vector<16x24xf32>
    %333 = tpu.matmul %332, %330, %cst_200 {dimension_numbers = #tpu.dot_dimension_numbers<[1], [0], [0], [1], [0, 0, 1, 1], [], []>} : vector<16x48xf32>, vector<48x24xf32>, vector<16x24xf32> -> vector<16x24xf32>
    %334 = vector.broadcast %331 : vector<1x24xf32> to vector<16x24xf32>
    %335 = arith.addf %333, %334 : vector<16x24xf32>
    %336 = vector.shape_cast %335 : vector<16x24xf32> to vector<1x16x24xf32>
    %cst_201 = arith.constant 0.000000e+00 : f32
    %337 = vector.broadcast %cst_201 : f32 to vector<1x16x24xf32>
    %338 = arith.maximumf %336, %337 : vector<1x16x24xf32>
    %cst_202 = arith.constant 0.000000e+00 : f32
    %339 = vector.broadcast %cst_202 : f32 to vector<1x4x24xf32>
    %340 = vector.extract_strided_slice %338 {offsets = [0, 0, 0], sizes = [1, 12, 24], strides = [1, 1, 1]} : vector<1x16x24xf32> to vector<1x12x24xf32>
    %341 = tpu.concatenate %339, %340 in 1 : vector<1x4x24xf32>, vector<1x12x24xf32> -> vector<1x16x24xf32>
    %342 = tpu.concatenate %341, %338 in 2 : vector<1x16x24xf32>, vector<1x16x24xf32> -> vector<1x16x48xf32>
    %c336_203 = arith.constant 336 : index
    %c24_204 = arith.constant 24 : index
    %343 = vector.load %arg4[%c336_203, %c24_204] : memref<384x128xf32, #tpu.memory_space<vmem>>, vector<48x24xf32>
    %c336_205 = arith.constant 336 : index
    %c72_206 = arith.constant 72 : index
    %344 = vector.load %arg4[%c336_205, %c72_206] : memref<384x128xf32, #tpu.memory_space<vmem>>, vector<1x24xf32>
    %345 = vector.shape_cast %342 : vector<1x16x48xf32> to vector<16x48xf32>
    %cst_207 = arith.constant dense<0.000000e+00> : vector<16x24xf32>
    %346 = tpu.matmul %345, %343, %cst_207 {dimension_numbers = #tpu.dot_dimension_numbers<[1], [0], [0], [1], [0, 0, 1, 1], [], []>} : vector<16x48xf32>, vector<48x24xf32>, vector<16x24xf32> -> vector<16x24xf32>
    %347 = vector.broadcast %344 : vector<1x24xf32> to vector<16x24xf32>
    %348 = arith.addf %346, %347 : vector<16x24xf32>
    %349 = vector.shape_cast %348 : vector<16x24xf32> to vector<1x16x24xf32>
    %cst_208 = arith.constant 0.000000e+00 : f32
    %350 = vector.broadcast %cst_208 : f32 to vector<1x16x24xf32>
    %351 = arith.maximumf %349, %350 : vector<1x16x24xf32>
    %352 = arith.addf %351, %325 : vector<1x16x24xf32>
    %cst_209 = arith.constant 0.000000e+00 : f32
    %353 = vector.broadcast %cst_209 : f32 to vector<1x16x24xf32>
    %354 = arith.maximumf %352, %353 : vector<1x16x24xf32>
    %c16_210 = arith.constant 16 : index
    %c48_211 = arith.constant 48 : index
    %355 = vector.load %arg4[%c16_210, %c48_211] : memref<384x128xf32, #tpu.memory_space<vmem>>, vector<24x16xf32>
    %c16_212 = arith.constant 16 : index
    %c64_213 = arith.constant 64 : index
    %356 = vector.load %arg4[%c16_212, %c64_213] : memref<384x128xf32, #tpu.memory_space<vmem>>, vector<1x16xf32>
    %357 = vector.shape_cast %354 : vector<1x16x24xf32> to vector<16x24xf32>
    %cst_214 = arith.constant dense<0.000000e+00> : vector<16x16xf32>
    %358 = tpu.matmul %357, %355, %cst_214 {dimension_numbers = #tpu.dot_dimension_numbers<[1], [0], [0], [1], [0, 0, 1, 1], [], []>} : vector<16x24xf32>, vector<24x16xf32>, vector<16x16xf32> -> vector<16x16xf32>
    %359 = vector.broadcast %356 : vector<1x16xf32> to vector<16x16xf32>
    %360 = arith.addf %358, %359 : vector<16x16xf32>
    %361 = vector.shape_cast %360 : vector<16x16xf32> to vector<1x16x16xf32>
    %c0_215 = arith.constant 0 : index
    %c0_216 = arith.constant 0 : index
    %c0_217 = arith.constant 0 : index
    %362 = vector.load %arg5[%c0_215, %c0_216, %c0_217] : memref<1x16x16xf32, #tpu.memory_space<vmem>>, vector<1x16x16xf32>
    tpu.vector_store %arg5[%c0_215, %c0_216, %c0_217], %361 {strides = array<i32>} : memref<1x16x16xf32, #tpu.memory_space<vmem>>, vector<1x16x16xf32>,
    %363 = arith.subf %361, %0 : vector<1x16x16xf32>
    %364 = arith.mulf %363, %363 : vector<1x16x16xf32>
    %365 = vector.shape_cast %364 : vector<1x16x16xf32> to vector<1x1x16x16xf32>
    %cst_218 = arith.constant dense<0.000000e+00> : vector<1xf32>
    %366 = vector.multi_reduction <add>, %365, %cst_218 [1, 2, 3] : vector<1x1x16x16xf32> to vector<1xf32>
    %367 = vector.shape_cast %366 : vector<1xf32> to vector<1x1x1x1xf32>
    %368 = vector.extract %367[0, 0, 0, 0] : f32 from vector<1x1x1x1xf32>
    %369 = vector.broadcast %368 : f32 to vector<1x1x1xf32>
    %c0_219 = arith.constant 0 : index
    %c0_220 = arith.constant 0 : index
    %c0_221 = arith.constant 0 : index
    %370 = vector.load %arg6[%c0_219, %c0_220, %c0_221] : memref<1x1x1xf32, #tpu.memory_space<vmem>>, vector<1x1x1xf32>
    tpu.vector_store %arg6[%c0_219, %c0_220, %c0_221], %369 {strides = array<i32>} : memref<1x1x1xf32, #tpu.memory_space<vmem>>, vector<1x1x1xf32>,
    return
  }
  func.func @transform_0(%arg0: i32, %arg1: memref<2x3xi32, #tpu.memory_space<smem>>, %arg2: memref<2x16xi32, #tpu.memory_space<smem>>) -> (i32, i32, i32) {
    %c0_i32 = arith.constant 0 : i32
    %c0_i32_0 = arith.constant 0 : i32
    %c0_i32_1 = arith.constant 0 : i32
    return %arg0, %c0_i32, %c0_i32_0 : i32, i32, i32
  }
  func.func @transform_1(%arg0: i32, %arg1: memref<2x3xi32, #tpu.memory_space<smem>>, %arg2: memref<2x16xi32, #tpu.memory_space<smem>>) -> (i32, i32) {
    %c0_i32 = arith.constant 0 : i32
    %c0_i32_0 = arith.constant 0 : i32
    %c0_i32_1 = arith.constant 0 : i32
    return %c0_i32, %c0_i32_0 : i32, i32
  }
  func.func @transform_2(%arg0: i32, %arg1: memref<2x3xi32, #tpu.memory_space<smem>>, %arg2: memref<2x16xi32, #tpu.memory_space<smem>>) -> (i32, i32, i32) {
    %c0_i32 = arith.constant 0 : i32
    %c0_i32_0 = arith.constant 0 : i32
    %c0_i32_1 = arith.constant 0 : i32
    return %arg0, %c0_i32, %c0_i32_0 : i32, i32, i32
  }
  func.func @transform_3(%arg0: i32, %arg1: memref<2x3xi32, #tpu.memory_space<smem>>, %arg2: memref<2x16xi32, #tpu.memory_space<smem>>) -> (i32, i32, i32) {
    %c0_i32 = arith.constant 0 : i32
    %c0_i32_0 = arith.constant 0 : i32
    %c0_i32_1 = arith.constant 0 : i32
    return %arg0, %c0_i32, %c0_i32_0 : i32, i32, i32
  }
}

</mosaic_0001>

<bundles_post_ra>
// kernel: forward.1
= control target key start
LH: loop header
LB: loop body
LE: loop exit
PB: predicated region body
PF: predicated region fallthrough
CT: control target
= control target key end

     0   :  { %s3451_s0 = inlined_call_operand.vmem [shape: s32[2,3], index: 0, kind: input, shape index: {}]   ;;  %s3452_s2 = inlined_call_operand.vmem [shape: f32[2,16,16], index: 2, kind: input, shape index: {}]   ;;  %s3453_s3 = inlined_call_operand.vmem [shape: f32[384,128], index: 3, kind: input, shape index: {}]   ;;  %s3454_s4 = inlined_call_operand.vmem [shape: f32[2,16,16], index: 4, kind: output, shape index: {0}]   ;;  %s3455_s5 = inlined_call_operand.vmem [shape: f32[2,1,1], index: 5, kind: output, shape index: {1}]   ;;  %s3456_s1 = inlined_call_operand.vmem [shape: s32[2,16], index: 1, kind: input, shape index: {}]  }
   0x1   :  { %s11_s20 = sshll.u32 %s3451_s0, 4  ;;  %s15_s23 = sshll.u32 %s3456_s1, 4  ;;  %s12_s20 = int_to_ptr.vmem [resolvable:$true] %s11_s20  ;;  %s16_s23 = int_to_ptr.vmem [resolvable:$true] %s15_s23 }
   0x2   :  { %s2799_s24 = scalar_lea.vmem %s12_s20, 32  ;;  %p2804_p1 = scmp.lt.s32.totalorder %s12_s20, %s12_s20 }
   0x3   :  { %p2800_p0 = scmp.ne.s32.totalorder %s12_s20, %s2799_s24  ;;  %p2805_p2 = scmp.lt.s32.totalorder %s2799_s24, %s2799_s24 }
   0x5   :  { %p2806_p3 = por %p2805_p2, %p2804_p1 }
   0x7   :  { %p2807_p4 = pnand %p2806_p3, %p2800_p0 }
   0x9   :  { %2810 = shalt.err (!%p2807_p4)  }
   0xa   :  { %s2833_s25 = smov [#allocation7]   ;;  %s2811_s26 = scalar_lea.vmem %s16_s23, 32 }
   0xb   :  { %14 = dma.vmem_to_smem %s12_s20, 32, %s2833_s25, [#allocation6] }
   0xc   :  { %p2812_p5 = scmp.ne.s32.totalorder %s16_s23, %s2811_s26  ;;  %p2816_p6 = scmp.lt.s32.totalorder %s16_s23, %s16_s23 }
   0xd   :  { %p2817_p7 = scmp.lt.s32.totalorder %s2811_s26, %s2811_s26 }
   0xf   :  { %p2818_p8 = por %p2817_p7, %p2816_p6 }
  0x11   :  { %p2819_p9 = pnand %p2818_p8, %p2812_p5 }
  0x13   :  { %2822 = shalt.err (!%p2819_p9)  }
  0x14   :  { %s2834_s0 = smov [#allocation8]  }
  0x15   :  { %18 = dma.vmem_to_smem %s16_s23, 32, %s2834_s0, [#allocation6] }
  0x16   :  { %2827 = dma.done.wait [#allocation6], 64 }
  0x17   :  { %2828 = vsyncadd [#allocation6], 4294967232 }
  0x18   :  { %20 = sfence }
  0x19   :  { %s2882_s1 = smov 0  }
  0x1a LB: > { %s2888_s27 = sadd.s32 4294967295, %s2831_s1   ;;  %p2117_p10 = scmp.ge.s32.totalorder %s2831_s1, 1  ;;  %s2831_s1 = sphi %s2882_s1, %s26_s1  }
  0x1b   : > { %p152_p11 = scmp.lt.s32.totalorder %s2831_s1, 3 }
  0x1d   : > { %p153_p12 = pnand %p2117_p10, %p152_p11 }
  0x1e   : > { %v2895_v0 = vld [vmem:[%s3453_s3] sm:$0xff] (!%p153_p12)  ;;  %v2900_v1 = vld [vmem:[%s3453_s3 + $0x8] sm:$0xff] (!%p153_p12)  ;;  %p179_p13 = scmp.lt.s32.totalorder (!%p153_p12), %s2888_s27, 1  ;;  %s2835_s10 = smov (!%p153_p12), 96   ;;  %vm205_vm0 = vcmask (!%p153_p12), 130048   ;;  %v2931_v6 = vld [vmem:[%s3453_s3 + $0x30] sm:$0xff] (!%p153_p12) }
  0x1f   : > { %156 = sbr.rel (%p153_p12) target bundleno = 4974 (0x136e), region = 28  ;;  %v2122_v2 = vld [vmem:[%s3453_s3] ss:$0 sm:$0xff] (!%p153_p12)  ;;  %v2506_v3 = vpack.c.bf16 (!%p153_p12), %v2900_v1, %v2895_v0  ;;  %s3458_s11 = smov (!%p153_p12), 64   ;;  %v2936_v7 = vld [vmem:[%s3453_s3 + $0x38] sm:$0xff] (!%p153_p12)  ;;  %v2837_v9 = vmov (!%p153_p12), 0.0|0.0  }
  0x20   : > { %202 = vrot.lane.b32.xlu0 (!%p153_p12), %v2122_v2, %s2835_s10  ;;  %291 = vrot.lane.b32.xlu1 (!%p153_p12), %v2900_v1, %s3458_s11  ;;  %v328_v8 = vld [vmem:[%s3453_s3 + $0x40] sm:$0xff] (!%p153_p12)  ;;  %v2687_v10 = vpack.i.bf16 (!%p153_p12), %v2936_v7, %v2931_v6  ;;  %v2511_v11 = vpack.c.bf16 (!%p153_p12), %v2936_v7, %v2931_v6  ;;  %v329_v12 = vld [vmem:[%s3453_s3 + $0x48] sm:$0xff] (!%p153_p12)  ;;  %s2967_s7 = sshll.u32 (!%p153_p12), %s2888_s27, 7  ;;  %vm297_vm1 = vcmask (!%p153_p12), 261120   ;;  %vm2838_vm2 = vmmov (!%p153_p12), 0   ;;  %s2840_s22 = smov (!%p153_p12), 32  }
  0x21   : > { %2507 = vmatprep.subr.bf16.mxu0 (!%p153_p12), %v2506_v3  ;;  %2510 = vmatprep.subr.bf16.mxu1 (!%p153_p12), %v2837_v9  ;;  %v2514_v13 = vpack.c.bf16 (!%p153_p12), %v329_v12, %v328_v8  ;;  %v330_v14 = vld [vmem:[%s3453_s3 + $0x50] sm:$0xff] (!%p153_p12)  ;;  %v331_v15 = vld [vmem:[%s3453_s3 + $0x58] sm:$0xff] (!%p153_p12)  ;;  %v332_v17 = vld [vmem:[%s3453_s3 + $0x60] sm:$0xff] (!%p153_p12)  ;;  %s306_s8 = sadd.s32 (!%p153_p12), 1, %s2967_s7  ;;  %s311_s13 = sadd.s32 (!%p153_p12), 2, %s2967_s7  ;;  %v2839_v29 = vmov (!%p153_p12), 0.0   ;;  %v2692_v31 = vpack.i.bf16 (!%p153_p12), %v329_v12, %v328_v8 }
  0x22   : > { %2509 = vmatpush3.bf16.msra.mxu0 (!%p153_p12), %v2506_v3  ;;  %2512 = vmatpush3.bf16.msra.mxu1 (!%p153_p12), %v2511_v11  ;;  %v2517_v16 = vpack.c.bf16 (!%p153_p12), %v331_v15, %v330_v14  ;;  %v333_v18 = vld [vmem:[%s3453_s3 + $0x68] sm:$0xff] (!%p153_p12)  ;;  %s301_s14 = sld [smem:[#allocation7 + %s2967_s7]] (!%p153_p12)  ;;  %v2126_v30 = vld [vmem:[%s3453_s3 + $0x30] ss:$0 sm:$0xff] (!%p153_p12)  ;;  %vm304_vm3 = vcmask (!%p153_p12), 253952   ;;  %v2697_v37 = vpack.i.bf16 (!%p153_p12), %v331_v15, %v330_v14  ;;  %vm320_vm4 = vcmask (!%p153_p12), 1040384  }
  0x23   : > { %2522 = vmatprep.subr.bf16.mxu0 (!%p153_p12), %v2837_v9  ;;  %2513 = vmatprep.subr.bf16.mxu1 (!%p153_p12), %v2837_v9  ;;  %v2520_v19 = vpack.c.bf16 (!%p153_p12), %v333_v18, %v332_v17  ;;  %s307_s16 = sld [smem:[#allocation7 + %s306_s8]] (!%p153_p12)  ;;  %v2702_v35 = vpack.i.bf16 (!%p153_p12), %v333_v18, %v332_v17  ;;  %vm343_vm5 = vcmask (!%p153_p12), 523264   ;;  %v547_v6 = vld [vmem:[%s3453_s3 + $0x78] sm:$0xff] (!%p153_p12)  ;;  %v548_v7 = vld [vmem:[%s3453_s3 + $0x80] sm:$0xff] (!%p153_p12)  ;;  %v550_v12 = vld [vmem:[%s3453_s3 + $0x90] sm:$0xff] (!%p153_p12)  ;;  %vm540_vm6 = vcmask (!%p153_p12), 1041408  }
  0x24   : > { %289 = vrot.lane.b32.xlu0 (!%p153_p12), %v2895_v0, %s3458_s11  ;;  %2298 = vmatprep.mubr.msk.f32.mxu1 (!%p153_p12), %vm2838_vm2, %v2839_v29  ;;  %v552_v15 = vld [vmem:[%s3453_s3 + $0xa0] sm:$0xff] (!%p153_p12)  ;;  %v2129_v18 = vld [vmem:[%s3453_s3 + $0x70] ss:$0 sm:$0xff] (!%p153_p12)  ;;  %s2842_s17 = smov (!%p153_p12), 48   ;;  %vm1057_vm7 = vcmask (!%p153_p12), 195584   ;;  %s1075_s29 = sadd.s32 (!%p153_p12), 3, %s2967_s7 }
  0x25   : > { %s3200_s30 = sld [smem:[#allocation8 + %s2967_s7]] (!%p153_p12)  ;;  %s1085_s18 = sadd.s32 (!%p153_p12), 5, %s2967_s7  ;;  %vm1060_vm8 = vcmask (!%p153_p12), 190464   ;;  %vm1065_vm9 = vcmask (!%p153_p12), 188416   ;;  %vm1185_vm10 = vcmask (!%p153_p12), 392192   ;;  %vm1645_vm11 = vcmask (!%p153_p12), 1043456  }
  0x26   : > { %s2909_s9 = scalar_select %p179_p13, %s2888_s27, 1  ;;  %2515 = vmatpush3.bf16.msra.mxu1 %v2514_v13  ;;  %v551_v13 = vld [vmem:[%s3453_s3 + $0x98] sm:$0xff]  ;;  %vm2012_vm12 = vcmask 0  }
  0x27   : > { %2516 = vmatprep.subr.bf16.mxu1 %v2837_v9  ;;  %s312_s27 = sld [smem:[#allocation7 + %s311_s13]]  ;;  %v2541_v14 = vpack.c.bf16 %v551_v13, %v550_v12  ;;  %s1110_s26 = sadd.s32 10, %s2967_s7 }
  0x28   : > { %s3457_s12 = sshll.u32 %s2909_s9, 4  ;;  %340 = vrot.lane.b32.xlu0 %v2126_v30, %s3458_s11  ;;  %s302_s19 = scalar_lea.vmem [#allocation2], %s301_s14 }
  0x29   : > { %s2920_s15 = scalar_lea.vmem %s3452_s2, %s3457_s12  ;;  %s308_s20 = scalar_lea.vmem [#allocation2], %s307_s16 }
  0x2a   : > { %v192_v4 = vld [vmem:[%s2920_s15] sm:$0xff]  ;;  %v193_v5 = vld [vmem:[%s2920_s15 + $0x8] sm:$0xff]  ;;  %2518 = vmatpush3.bf16.msra.mxu1 %v2517_v16  ;;  %s3204_s6 = sld [smem:[#allocation8 + %s306_s8]]  ;;  %s1115_s0 = sadd.s32 11, %s2967_s7 }
  0x2b   : > { %2279 = vmatprep.mubr.msk.f32.mxu0 %vm205_vm0, %v192_v4  ;;  %2519 = vmatprep.subr.bf16.mxu1 %v2837_v9  ;;  %v553_v16 = vld [vmem:[%s3453_s3 + $0xa8] sm:$0xff]  ;;  %s3208_s14 = sld [smem:[#allocation8 + %s311_s13]]  ;;  %s1120_s28 = sadd.s32 12, %s2967_s7 }
  0x2c   : > { %2280 = vmatmul.mubr.msk.f32.vlgmr.msra.gmra.mrb[0].mxu0 %vm205_vm0, %v193_v5  ;;  %2693 = vrot.lane.b32.xlu0 %v2692_v31, %s2835_s10  ;;  %v546_v5 = vld [vmem:[%s3453_s3 + $0x70] sm:$0xff]  ;;  %v2544_v17 = vpack.c.bf16 %v553_v16, %v552_v15  ;;  %s3210_s16 = sld [smem:[#allocation8 + %s1075_s29]]  ;;  %s1125_s29 = sadd.s32 13, %s2967_s7 }
  0x2d   : > { %2317 = vmatprep.mubr.msk.f32.mxu0 %vm2838_vm2, %v2839_v29  ;;  %s313_s21 = scalar_lea.vmem [#allocation2], %s312_s27  ;;  %v2535_v8 = vpack.c.bf16 %v547_v6, %v546_v5  ;;  %s2841_s27 = smov 104  }
  0x2e   : > { %2521 = vmatpush3.bf16.msra.mxu1 %v2520_v19  ;;  %s3220_s8 = sld [smem:[#allocation8 + %s1085_s18]]  ;;  %s1130_s12 = sadd.s32 14, %s2967_s7 }
  0x2f   : > { %2534 = vmatprep.subr.bf16.mxu1 %v2837_v9  ;;  %s3238_s18 = sld [smem:[#allocation8 + %s1115_s0]] }
  0x30   : > { %2703 = vrot.lane.b32.xlu0 %v2702_v35, %s2835_s10 }
  0x31   : > { %s1072_s0 = scalar_lea.vmem [#allocation4], %s3208_s14 }
  0x34   : > { %458 = vrot.lane.b32.xlu0 %v2126_v30, %s2840_s22  ;;  %v2717_v30 = vpack.i.bf16 %v551_v13, %v550_v12 }
  0x38   : > { %560 = vrot.lane.b32.xlu0 %v2129_v18, %s3458_s11 }
  0x92   : > { %v203_v20 = vpop.permute.xlu0 %202  ;;  %v292_v22 = vpop.permute.xlu1 %291 }
  0x96   : > { %v290_v25 = vpop.permute.xlu0 %289 }
  0x9a   : > { %v341_v42 = vpop.permute.xlu0 %340 }
  0x9e   : > { %v2694_v44 = vpop.permute.xlu0 %2693 }
  0x9f   : > { %v2696_v47 = vunpack.i.h.bf16 %v2694_v44  ;;  %v2695_v48 = vunpack.i.l.bf16 %v2694_v44 }
  0xa1   : > { %v2526_v51 = vpack.c.bf16 %v2696_v47, %v2695_v48 }
  0xa2   : > { %v2704_v54 = vpop.permute.xlu0 %2703 }
  0xa3   : > { %v2706_v56 = vunpack.i.h.bf16 %v2704_v54  ;;  %v2705_v57 = vunpack.i.l.bf16 %v2704_v54 }
  0xa5   : > { %v2532_v58 = vpack.c.bf16 %v2706_v56, %v2705_v57 }
  0xa6   : > { %v459_v19 = vpop.permute.xlu0 %458 }
  0xaa   : > { %v561_v35 = vpop.permute.xlu0 %560 }
  0xff   : > { %v2281_v21 = vpop.f32.mrb[0].mxu0 }
 0x100   : > { %v284_v23 = vadd.f32 %v2281_v21, %v203_v20  ;;  %v278_v24 = vpop.f32.mrb[1].mxu0 }
 0x101   : > { %v279_v26 = vadd.f32 %v278_v24, %v203_v20  ;;  %v2722_v24 = vpack.i.bf16 %v553_v16, %v552_v15 }
 0x102   : > { %v296_v27 = vadd.f32 %v292_v22, %v284_v23 }
 0x103   : > { %v295_v28 = vadd.f32 %v290_v25, %v279_v26 }
 0x104   : > { %299 = vst.msk [vmem:[#allocation2 + $0x8] sm:$0xff] %vm297_vm1, %v296_v27 }
 0x105   : > { %298 = vst.msk [vmem:[#allocation2] sm:$0xff] %vm297_vm1, %v295_v28  ;;  %v2707_v28 = vpack.i.bf16 %v547_v6, %v546_v5  ;;  %v766_v5 = vld [vmem:[%s3453_s3 + $0xd8] sm:$0xff] }
 0x10c   : > { %v303_v32 = vld [vmem:[%s302_s19] sm:$0x1]  ;;  %s1090_s19 = sadd.s32 6, %s2967_s7 }
 0x10d   : > { %v309_v33 = vld [vmem:[%s308_s20] sm:$0x1]  ;;  %305 = vst.msk [vmem:[#allocation3] sm:$0x1] %vm304_vm3, %v303_v32  ;;  %s1100_s20 = sadd.s32 8, %s2967_s7  ;;  %s3222_s24 = sld [smem:[#allocation8 + %s1090_s19]] }
 0x10e   : > { %v314_v34 = vld [vmem:[%s313_s21] sm:$0x1]  ;;  %310 = vst.msk [vmem:[#allocation3 + $0x1] sm:$0x1] %vm304_vm3, %v309_v33  ;;  %s1105_s21 = sadd.s32 9, %s2967_s7  ;;  %s3240_s19 = sld [smem:[#allocation8 + %s1120_s28]] }
 0x10f   : > { %315 = vst.msk [vmem:[#allocation3 + $0x2] sm:$0x1] %vm304_vm3, %v314_v34  ;;  %s3228_s25 = sld [smem:[#allocation8 + %s1105_s21]]  ;;  %s1077_s28 = scalar_lea.vmem [#allocation4], %s3210_s16 }
 0x115   : > { %s1107_s16 = scalar_lea.vmem [#allocation4], %s3228_s25  ;;  %s2843_s25 = smov 24  }
 0x116   : > { %v2988_v36 = vld [vmem:[#allocation3] sm:$0x7] }
 0x117   : > { %322 = vrot.lane.b32.xlu1 %v2988_v36, %s2840_s22  ;;  %v318_v38 = vrot.slane %v2988_v36, 7 }
 0x119   : > { %v321_v40 = vsel %vm320_vm4, 0.0, %v318_v38 }
 0x11b   : > { %2688 = vrot.lane.b32.xlu1 %v2687_v10, %s2835_s10  ;;  %v549_v10 = vld [vmem:[%s3453_s3 + $0x88] sm:$0xff] }
 0x11c   : > { %v2538_v11 = vpack.c.bf16 %v549_v10, %v548_v7  ;;  %v2712_v20 = vpack.i.bf16 %v549_v10, %v548_v7  ;;  %v767_v7 = vld [vmem:[%s3453_s3 + $0xe0] sm:$0xff] }
 0x11e   : > { %2713 = vrot.lane.b32.xlu0 %v2712_v20, %s2835_s10 }
 0x11f   : > { %2698 = vrot.lane.b32.xlu1 %v2697_v37, %s2835_s10 }
 0x122   : > { %2723 = vrot.lane.b32.xlu0 %v2722_v24, %s2835_s10 }
 0x126   : > { %677 = vrot.lane.b32.xlu0 %v2129_v18, %s2840_s22 }
 0x189   : > { %v323_v39 = vpop.permute.xlu1 %322 }
 0x18a   : > { %v325_v41 = vsel %vm297_vm1, %v321_v40, %v323_v39 }
 0x18b   : > { %2299 = vmatmul.mubr.msk.f32.vlgmr.msra.gmra.mrb[0].mxu1 %vm343_vm5, %v325_v41 }
 0x18c   : > { %2336 = vmatprep.mubr.msk.f32.mxu1 %vm2838_vm2, %v2839_v29  ;;  %2536 = vmatpush3.bf16.msra.mxu1 %v2535_v8  ;;  %v768_v8 = vld [vmem:[%s3453_s3 + $0xe8] sm:$0xff] }
 0x18d   : > { %v2689_v43 = vpop.permute.xlu1 %2688  ;;  %2537 = vmatprep.subr.bf16.mxu1 %v2837_v9  ;;  %v2568_v10 = vpack.c.bf16 %v768_v8, %v767_v7 }
 0x18e   : > { %v2691_v45 = vunpack.i.h.bf16 %v2689_v43  ;;  %v2690_v46 = vunpack.i.l.bf16 %v2689_v43 }
 0x190   : > { %v2523_v49 = vpack.c.bf16 %v2691_v45, %v2690_v46  ;;  %2539 = vmatpush3.bf16.msra.mxu1 %v2538_v11  ;;  %v2714_v37 = vpop.permute.xlu0 %2713  ;;  %v2132_v11 = vld [vmem:[%s3453_s3 + $0xb0] ss:$0 sm:$0xff] }
 0x191   : > { %v2699_v50 = vpop.permute.xlu1 %2698  ;;  %2540 = vmatprep.subr.bf16.mxu1 %v2837_v9  ;;  %v2716_v40 = vunpack.i.h.bf16 %v2714_v37  ;;  %v2715_v41 = vunpack.i.l.bf16 %v2714_v37  ;;  %775 = vrot.lane.b32.xlu0 %v2132_v11, %s3458_s11  ;;  %s3236_s11 = sld [smem:[#allocation8 + %s1110_s26]]  ;;  %s1068_s26 = scalar_lea.vmem [#allocation4], %s3204_s6 }
 0x192   : > { %2524 = vmatpush3.bf16.msra.mxu0 %v2523_v49  ;;  %v2701_v52 = vunpack.i.h.bf16 %v2699_v50  ;;  %v2700_v53 = vunpack.i.l.bf16 %v2699_v50 }
 0x193   : > { %2525 = vmatprep.subr.bf16.mxu0 %v2837_v9  ;;  %v2550_v44 = vpack.c.bf16 %v2716_v40, %v2715_v41 }
 0x194   : > { %v2529_v55 = vpack.c.bf16 %v2701_v52, %v2700_v53  ;;  %2542 = vmatpush3.bf16.msra.mxu1 %v2541_v14  ;;  %v2724_v47 = vpop.permute.xlu0 %2723 }
 0x195   : > { %2543 = vmatprep.subr.bf16.mxu1 %v2837_v9  ;;  %v2726_v49 = vunpack.i.h.bf16 %v2724_v47  ;;  %v2725_v50 = vunpack.i.l.bf16 %v2724_v47 }
 0x196   : > { %2527 = vmatpush3.bf16.msra.mxu0 %v2526_v51 }
 0x197   : > { %2528 = vmatprep.subr.bf16.mxu0 %v2837_v9  ;;  %v2556_v51 = vpack.c.bf16 %v2726_v49, %v2725_v50  ;;  %v3131_v49 = vld [vmem:[%s3453_s3 + $0x18] sm:$0xff] }
 0x198   : > { %2545 = vmatpush3.bf16.msra.mxu1 %v2544_v17  ;;  %v678_v12 = vpop.permute.xlu0 %677  ;;  %v2742_v17 = vpack.i.bf16 %v768_v8, %v767_v7 }
 0x199   : > { %2558 = vmatprep.subr.bf16.mxu1 %v2837_v9 }
 0x19a   : > { %2530 = vmatpush3.bf16.msra.mxu0 %v2529_v55 }
 0x19b   : > { %2531 = vmatprep.subr.bf16.mxu0 %v2837_v9 }
 0x19e   : > { %2533 = vmatpush3.bf16.msra.mxu0 %v2532_v58 }
 0x19f   : > { %2546 = vmatprep.subr.bf16.mxu0 %v2837_v9 }
 0x25e   : > { %v413_v59 = vpop.f32.mrb[0].mxu1 }
 0x25f   : > { %v414_v60 = vadd.f32 %v413_v59, %v341_v42  ;;  %v2300_v61 = vpop.f32.mrb[1].mxu1 }
 0x260   : > { %v762_v61 = vld [vmem:[%s3453_s3 + $0xb8] sm:$0xff] }
 0x261   : > { %v417_v62 = vmax.f32 %v414_v60, 0.0  ;;  %v761_v60 = vld [vmem:[%s3453_s3 + $0xb0] sm:$0xff] }
 0x263   : > { %422 = vrot.lane.b32.xlu1 %v417_v62, %s2840_s22  ;;  %v419_v63 = vrot.slane %v417_v62, 7  ;;  %v763_v62 = vld [vmem:[%s3453_s3 + $0xc0] sm:$0xff] }
 0x265   : > { %v421_v3 = vsel %vm320_vm4, 0.0, %v419_v63  ;;  %v2559_v63 = vpack.c.bf16 %v762_v61, %v761_v60 }
 0x2d5   : > { %v423_v2 = vpop.permute.xlu1 %422 }
 0x2d6   : > { %v425_v4 = vsel %vm297_vm1, %v421_v3, %v423_v2  ;;  %v764_v2 = vld [vmem:[%s3453_s3 + $0xc8] sm:$0xff] }
 0x2d7   : > { %2318 = vmatmul.mubr.msk.f32.vlgmr.msra.gmra.mrb[2].mxu0 %vm343_vm5, %v425_v4  ;;  %v2562_v3 = vpack.c.bf16 %v764_v2, %v763_v62  ;;  %v765_v4 = vld [vmem:[%s3453_s3 + $0xd0] sm:$0xff]  ;;  %v2732_v13 = vpack.i.bf16 %v764_v2, %v763_v62  ;;  %v3175_v62 = vld [vmem:[%s3453_s3 + $0x100] sm:$0xff]  ;;  %v3182_v2 = vld [vmem:[%s3453_s3 + $0x108] sm:$0xff] }
 0x2d8   : > { %2355 = vmatprep.mubr.msk.f32.mxu0 %vm2838_vm2, %v2839_v29  ;;  %v2565_v6 = vpack.c.bf16 %v766_v5, %v765_v4 }
 0x2d9   : > { %2733 = vrot.lane.b32.xlu0 %v2732_v13, %s2835_s10 }
 0x2dd   : > { %2743 = vrot.lane.b32.xlu0 %v2742_v17, %s2835_s10 }
 0x2e1   : > { %889 = vrot.lane.b32.xlu0 %v2132_v11, %s2840_s22 }
 0x3aa   : > { %v530_v21 = vpop.f32.mrb[2].mxu0 }
 0x3ab   : > { %v531_v22 = vadd.f32 %v530_v21, %v459_v19  ;;  %v2319_v23 = vpop.f32.mrb[3].mxu0  ;;  %v2727_v21 = vpack.i.bf16 %v762_v61, %v761_v60 }
 0x3ad   : > { %v534_v25 = vmax.f32 %v531_v22, 0.0  ;;  %v2737_v22 = vpack.i.bf16 %v766_v5, %v765_v4  ;;  %v3189_v4 = vld [vmem:[%s3453_s3 + $0x110] sm:$0xff]  ;;  %v3194_v5 = vld [vmem:[%s3453_s3 + $0x118] sm:$0xff] }
 0x3af   : > { %v535_v26 = vadd.f32 %v534_v25, %v2988_v36  ;;  %v776_v25 = vpop.permute.xlu0 %775 }
 0x3b1   : > { %v3046_v27 = vmax.f32 %v535_v26, 0.0 }
 0x3b3   : > { %542 = vrot.lane.b32.xlu1 %v3046_v27, %s2840_s22  ;;  %v538_v31 = vrot.slane %v3046_v27, 6 }
 0x3b5   : > { %v541_v33 = vsel %vm540_vm6, 0.0, %v538_v31 }
 0x3b7   : > { %2708 = vrot.lane.b32.xlu1 %v2707_v28, %s2835_s10 }
 0x3bb   : > { %2718 = vrot.lane.b32.xlu1 %v2717_v30, %s2835_s10 }
 0x425   : > { %v543_v32 = vpop.permute.xlu1 %542 }
 0x426   : > { %v545_v34 = vsel %vm297_vm1, %v541_v33, %v543_v32 }
 0x427   : > { %2337 = vmatmul.mubr.msk.f32.vlgmr.msra.gmra.mrb[2].mxu1 %vm343_vm5, %v545_v34 }
 0x428   : > { %2374 = vmatprep.mubr.msk.f32.mxu1 %vm2838_vm2, %v2839_v29  ;;  %2560 = vmatpush3.bf16.msra.mxu1 %v2559_v63 }
 0x429   : > { %v2709_v36 = vpop.permute.xlu1 %2708  ;;  %2561 = vmatprep.subr.bf16.mxu1 %v2837_v9 }
 0x42a   : > { %v2711_v38 = vunpack.i.h.bf16 %v2709_v36  ;;  %v2710_v39 = vunpack.i.l.bf16 %v2709_v36 }
 0x42c   : > { %v2547_v42 = vpack.c.bf16 %v2711_v38, %v2710_v39  ;;  %2563 = vmatpush3.bf16.msra.mxu1 %v2562_v3  ;;  %v2592_v3 = vpack.c.bf16 %v3182_v2, %v3175_v62 }
 0x42d   : > { %v2719_v43 = vpop.permute.xlu1 %2718  ;;  %2564 = vmatprep.subr.bf16.mxu1 %v2837_v9 }
 0x42e   : > { %2548 = vmatpush3.bf16.msra.mxu0 %v2547_v42  ;;  %v2721_v45 = vunpack.i.h.bf16 %v2719_v43  ;;  %v2720_v46 = vunpack.i.l.bf16 %v2719_v43 }
 0x42f   : > { %2549 = vmatprep.subr.bf16.mxu0 %v2837_v9 }
 0x430   : > { %v2553_v48 = vpack.c.bf16 %v2721_v45, %v2720_v46  ;;  %2566 = vmatpush3.bf16.msra.mxu1 %v2565_v6  ;;  %v2596_v6 = vpack.c.bf16 %v3194_v5, %v3189_v4 }
 0x431   : > { %2567 = vmatprep.subr.bf16.mxu1 %v2837_v9 }
 0x432   : > { %2551 = vmatpush3.bf16.msra.mxu0 %v2550_v44 }
 0x433   : > { %2552 = vmatprep.subr.bf16.mxu0 %v2837_v9 }
 0x434   : > { %2569 = vmatpush3.bf16.msra.mxu1 %v2568_v10 }
 0x435   : > { %2582 = vmatprep.subr.bf16.mxu1 %v2837_v9 }
 0x436   : > { %2554 = vmatpush3.bf16.msra.mxu0 %v2553_v48  ;;  %v3126_v48 = vld [vmem:[%s3453_s3 + $0x10] sm:$0xff] }
 0x437   : > { %2555 = vmatprep.subr.bf16.mxu0 %v2837_v9  ;;  %v2583_v50 = vpack.c.bf16 %v3131_v49, %v3126_v48 }
 0x43a   : > { %2557 = vmatpush3.bf16.msra.mxu0 %v2556_v51  ;;  %v3139_v51 = vld [vmem:[%s3453_s3 + $0x20] sm:$0xff] }
 0x43b   : > { %2570 = vmatprep.subr.bf16.mxu0 %v2837_v9 }
 0x4fa   : > { %v632_v52 = vpop.f32.mrb[2].mxu1 }
 0x4fb   : > { %v633_v53 = vadd.f32 %v632_v52, %v561_v35  ;;  %v2338_v54 = vpop.f32.mrb[3].mxu1  ;;  %v971_v52 = vld [vmem:[%s3453_s3 + $0x28] sm:$0xff] }
 0x4fc   : > { %v3148_v54 = vld [vmem:[%s3453_s3 + $0x10] ss:$0 sm:$0xff] }
 0x4fd   : > { %v636_v55 = vmax.f32 %v633_v53, 0.0  ;;  %v2586_v53 = vpack.c.bf16 %v971_v52, %v3139_v51  ;;  %1054 = vrot.lane.b32.xlu0 %v3148_v54, %s2842_s17  ;;  %s1080_s17 = sadd.s32 4, %s2967_s7 }
 0x4fe   : > { %s3218_s23 = sld [smem:[#allocation8 + %s1080_s17]]  ;;  %s1135_s17 = sadd.s32 15, %s2967_s7 }
 0x4ff   : > { %641 = vrot.lane.b32.xlu1 %v636_v55, %s2840_s22  ;;  %v638_v56 = vrot.slane %v636_v55, 6  ;;  %s3246_s21 = sld [smem:[#allocation8 + %s1135_s17]] }
 0x501   : > { %v640_v58 = vsel %vm540_vm6, 0.0, %v638_v56  ;;  %1148 = vrot.lane.b32.xlu0 %v2900_v1, %s2840_s22  ;;  %v3170_v1 = vld [vmem:[%s3453_s3 + $0xf8] sm:$0xff] }
 0x571   : > { %v642_v57 = vpop.permute.xlu1 %641 }
 0x572   : > { %v644_v59 = vsel %vm297_vm1, %v640_v58, %v642_v57 }
 0x573   : > { %2356 = vmatmul.mubr.msk.f32.vlgmr.msra.gmra.mrb[4].mxu0 %vm343_vm5, %v644_v59 }
 0x574   : > { %2393 = vmatprep.mubr.msk.f32.mxu0 %vm2838_vm2, %v2839_v29 }
 0x646   : > { %v749_v14 = vpop.f32.mrb[4].mxu0 }
 0x647   : > { %v750_v15 = vadd.f32 %v749_v14, %v678_v12  ;;  %v2357_v16 = vpop.f32.mrb[5].mxu0 }
 0x649   : > { %v753_v18 = vmax.f32 %v750_v15, 0.0 }
 0x64b   : > { %v3103_v19 = vadd.f32 %v753_v18, %v3046_v27  ;;  %v2734_v27 = vpop.permute.xlu0 %2733 }
 0x64c   : > { %v2736_v31 = vunpack.i.h.bf16 %v2734_v27  ;;  %v2735_v32 = vunpack.i.l.bf16 %v2734_v27 }
 0x64d   : > { %v755_v20 = vmax.f32 %v3103_v19, 0.0 }
 0x64e   : > { %v2574_v35 = vpack.c.bf16 %v2736_v31, %v2735_v32 }
 0x64f   : > { %757 = vrot.lane.b32.xlu1 %v755_v20, %s2840_s22  ;;  %v2744_v38 = vpop.permute.xlu0 %2743 }
 0x650   : > { %v2746_v40 = vunpack.i.h.bf16 %v2744_v38 }
 0x653   : > { %2728 = vrot.lane.b32.xlu1 %v2727_v21, %s2835_s10 }
 0x657   : > { %2738 = vrot.lane.b32.xlu1 %v2737_v22, %s2835_s10  ;;  %s3226_s10 = sld [smem:[#allocation8 + %s1100_s20]] }
 0x658   : > { %s3244_s20 = sld [smem:[#allocation8 + %s1130_s12]]  ;;  %s1087_s12 = scalar_lea.vmem [#allocation4], %s3220_s8 }
 0x659   : > { %s1117_s8 = scalar_lea.vmem [#allocation4], %s3238_s18 }
 0x65d   : > { %s1102_s14 = scalar_lea.vmem [#allocation4], %s3226_s10 }
 0x65e   : > { %s1132_s10 = scalar_lea.vmem [#allocation4], %s3244_s20 }
 0x6c1   : > { %v758_v23 = vpop.permute.xlu1 %757 }
 0x6c2   : > { %v760_v24 = vsel %vm297_vm1, 0.0, %v758_v23 }
 0x6c3   : > { %2375 = vmatmul.mubr.msk.f32.vlgmr.msra.gmra.mrb[4].mxu1 %vm343_vm5, %v760_v24 }
 0x6c4   : > { %2404 = vmatprep.mubr.msk.f32.mxu1 %vm2838_vm2, %v2839_v29  ;;  %v2745_v29 = vunpack.i.l.bf16 %v2744_v38  ;;  %2584 = vmatpush3.bf16.msra.mxu1 %v2583_v50  ;;  %v2757_v38 = vpack.i.bf16 %v3194_v5, %v3189_v4 }
 0x6c5   : > { %v2729_v26 = vpop.permute.xlu1 %2728  ;;  %2585 = vmatprep.subr.bf16.mxu1 %v2837_v9 }
 0x6c6   : > { %v2731_v28 = vunpack.i.h.bf16 %v2729_v26  ;;  %v2730_v30 = vunpack.i.l.bf16 %v2729_v26  ;;  %v2580_v41 = vpack.c.bf16 %v2746_v40, %v2745_v29 }
 0x6c8   : > { %v2571_v33 = vpack.c.bf16 %v2731_v28, %v2730_v30  ;;  %2587 = vmatpush3.bf16.msra.mxu1 %v2586_v53 }
 0x6c9   : > { %v2739_v34 = vpop.permute.xlu1 %2738 }
 0x6ca   : > { %2572 = vmatpush3.bf16.msra.mxu0 %v2571_v33  ;;  %v2741_v36 = vunpack.i.h.bf16 %v2739_v34  ;;  %v2740_v37 = vunpack.i.l.bf16 %v2739_v34 }
 0x6cb   : > { %2573 = vmatprep.subr.bf16.mxu0 %v2837_v9 }
 0x6cc   : > { %v2577_v39 = vpack.c.bf16 %v2741_v36, %v2740_v37  ;;  %v2752_v37 = vpack.i.bf16 %v3182_v2, %v3175_v62 }
 0x6ce   : > { %2575 = vmatpush3.bf16.msra.mxu0 %v2574_v35  ;;  %v2137_v35 = vld [vmem:[%s3453_s3 + $0xf0] ss:$0 sm:$0xff] }
 0x6cf   : > { %2576 = vmatprep.subr.bf16.mxu0 %v2837_v9 }
 0x6d2   : > { %2578 = vmatpush3.bf16.msra.mxu0 %v2577_v39 }
 0x6d3   : > { %2579 = vmatprep.subr.bf16.mxu0 %v2837_v9  ;;  %v890_v9 = vpop.permute.xlu0 %889 }
 0x6d6   : > { %2581 = vmatpush3.bf16.msra.mxu0 %v2580_v41 }
 0x6d7   : > { %v1055_v61 = vpop.permute.xlu0 %1054 }
 0x6d8   : > { %1058 = vst.msk [vmem:[#allocation4] sm:$0xff] %vm1057_vm7, %v1055_v61  ;;  %1059 = vst.msk [vmem:[#allocation4 + $0x8] sm:$0xff] %vm1057_vm7, %v1055_v61 }
 0x6db   : > { %v1149_v31 = vpop.permute.xlu0 %1148 }
 0x796   : > { %v847_v42 = vpop.f32.mrb[4].mxu1 }
 0x797   : > { %v848_v43 = vadd.f32 %v847_v42, %v776_v25  ;;  %v2376_v44 = vpop.f32.mrb[5].mxu1 }
 0x799   : > { %v851_v45 = vmax.f32 %v848_v43, 0.0 }
 0x79b   : > { %853 = vrot.lane.b32.xlu1 %v851_v45, %s2840_s22 }
 0x79f   : > { %978 = vrot.lane.b32.xlu1 %v3148_v54, %s2841_s27 }
 0x7a3   : > { %1146 = vrot.lane.b32.xlu1 %v2895_v0, %s2840_s22  ;;  %v3165_v0 = vld [vmem:[%s3453_s3 + $0xf0] sm:$0xff]  ;;  %s1095_s22 = sadd.s32 7, %s2967_s7  ;;  %s1063_s7 = scalar_lea.vmem [#allocation4], %s3200_s30 }
 0x7a4   : > { %v2588_v63 = vpack.c.bf16 %v3170_v1, %v3165_v0  ;;  %s3224_s13 = sld [smem:[#allocation8 + %s1095_s22]]  ;;  %s1092_s30 = scalar_lea.vmem [#allocation4], %s3222_s24  ;;  %v2747_v36 = vpack.i.bf16 %v3170_v1, %v3165_v0 }
 0x7a5   : > { %s3242_s22 = sld [smem:[#allocation8 + %s1125_s29]]  ;;  %s1082_s29 = scalar_lea.vmem [#allocation4], %s3218_s23 }
 0x7a6   : > { %2589 = vmatprep.subr.bf16.mxu0 %v2588_v63  ;;  %s1112_s23 = scalar_lea.vmem [#allocation4], %s3236_s11  ;;  %s1122_s24 = scalar_lea.vmem [#allocation4], %s3240_s19 }
 0x7a7   : > { %s1137_s11 = scalar_lea.vmem [#allocation4], %s3246_s21  ;;  %s2844_s19 = smov 80  }
 0x7aa   : > { %s1097_s6 = scalar_lea.vmem [#allocation4], %s3224_s13 }
 0x7ab   : > { %s1127_s13 = scalar_lea.vmem [#allocation4], %s3242_s22  ;;  %s2845_s22 = smov 56  }
 0x80d   : > { %v854_v46 = vpop.permute.xlu1 %853 }
 0x80e   : > { %v856_v47 = vsel %vm297_vm1, 0.0, %v854_v46 }
 0x80f   : > { %2394 = vmatmul.mubr.msk.f32.vlgmr.msra.gmra.mrb[6].mxu0 %vm343_vm5, %v856_v47 }
 0x810   : > { %2591 = vmatpush3.bf16.msra.mxu0 %v2588_v63 }
 0x811   : > { %2593 = vmatprep.subr.bf16.mxu0 %v2592_v3  ;;  %v979_v7 = vpop.permute.xlu1 %978 }
 0x814   : > { %2595 = vmatpush3.bf16.msra.mxu0 %v2592_v3 }
 0x815   : > { %2597 = vmatprep.subr.bf16.mxu0 %v2596_v6  ;;  %v1147_v28 = vpop.permute.xlu1 %1146 }
 0x818   : > { %2599 = vmatpush3.bf16.msra.mxu0 %v2596_v6 }
 0x8e2   : > { %v961_v55 = vpop.f32.mrb[6].mxu0 }
 0x8e3   : > { %v962_v56 = vadd.f32 %v961_v55, %v890_v9  ;;  %v2395_v57 = vpop.f32.mrb[7].mxu0 }
 0x8e5   : > { %v965_v58 = vmax.f32 %v962_v56, 0.0 }
 0x8e7   : > { %v966_v59 = vadd.f32 %v965_v58, %v755_v20 }
 0x8e9   : > { %v967_v60 = vmax.f32 %v966_v59, 0.0 }
 0x8eb   : > { %2405 = vmatmul.mubr.msk.f32.vlgmr.msra.gmra.mrb[6].mxu1 %vm297_vm1, %v967_v60 }
 0x9be   : > { %v1050_v8 = vpop.f32.mrb[6].mxu1 }
 0x9bf   : > { %v1051_v10 = vadd.f32 %v1050_v8, %v979_v7  ;;  %v2406_v11 = vpop.f32.mrb[7].mxu1 }
 0x9c1   : > { %1061 = vst.msk [vmem:[#allocation4] sm:$0x7] %vm1060_vm8, %v1051_v10 }
 0x9c8   : > { %v1064_v12 = vld [vmem:[%s1063_s7] sm:$0x1] }
 0x9c9   : > { %v1069_v13 = vld [vmem:[%s1068_s26] sm:$0x1]  ;;  %1066 = vst.msk [vmem:[#allocation5] sm:$0x1] %vm1065_vm9, %v1064_v12 }
 0x9ca   : > { %v1073_v14 = vld [vmem:[%s1072_s0] sm:$0x1]  ;;  %1070 = vst.msk [vmem:[#allocation5 + $0x1] sm:$0x1] %vm1065_vm9, %v1069_v13 }
 0x9cb   : > { %v1078_v15 = vld [vmem:[%s1077_s28] sm:$0x1]  ;;  %1074 = vst.msk [vmem:[#allocation5 + $0x2] sm:$0x1] %vm1065_vm9, %v1073_v14  ;;  %v1416_v14 = vld [vmem:[%s3453_s3 + $0x128] sm:$0xff] }
 0x9cc   : > { %v1083_v16 = vld [vmem:[%s1082_s29] sm:$0x1]  ;;  %1079 = vst.msk [vmem:[#allocation5 + $0x3] sm:$0x1] %vm1065_vm9, %v1078_v15  ;;  %v1417_v15 = vld [vmem:[%s3453_s3 + $0x130] sm:$0xff] }
 0x9cd   : > { %v1088_v17 = vld [vmem:[%s1087_s12] sm:$0x1]  ;;  %1084 = vst.msk [vmem:[#allocation5 + $0x4] sm:$0x1] %vm1065_vm9, %v1083_v16 }
 0x9ce   : > { %v1093_v18 = vld [vmem:[%s1092_s30] sm:$0x1]  ;;  %1089 = vst.msk [vmem:[#allocation5 + $0x5] sm:$0x1] %vm1065_vm9, %v1088_v17  ;;  %v1418_v17 = vld [vmem:[%s3453_s3 + $0x138] sm:$0xff] }
 0x9cf   : > { %v1098_v19 = vld [vmem:[%s1097_s6] sm:$0x1]  ;;  %1094 = vst.msk [vmem:[#allocation5 + $0x6] sm:$0x1] %vm1065_vm9, %v1093_v18  ;;  %v2616_v18 = vpack.c.bf16 %v1418_v17, %v1417_v15 }
 0x9d0   : > { %v1103_v20 = vld [vmem:[%s1102_s14] sm:$0x1]  ;;  %1099 = vst.msk [vmem:[#allocation5 + $0x7] sm:$0x1] %vm1065_vm9, %v1098_v19  ;;  %s191_s14 = scalar_lea.vmem %s3455_s5, %s2909_s9 }
 0x9d1   : > { %v1108_v21 = vld [vmem:[%s1107_s16] sm:$0x1]  ;;  %1104 = vst.msk [vmem:[#allocation5 + $0x8] sm:$0x1] %vm1065_vm9, %v1103_v20  ;;  %v1420_v20 = vld [vmem:[%s3453_s3 + $0x148] sm:$0xff] }
 0x9d2   : > { %v1113_v22 = vld [vmem:[%s1112_s23] sm:$0x1]  ;;  %1109 = vst.msk [vmem:[#allocation5 + $0x9] sm:$0x1] %vm1065_vm9, %v1108_v21 }
 0x9d3   : > { %v1118_v23 = vld [vmem:[%s1117_s8] sm:$0x1]  ;;  %1114 = vst.msk [vmem:[#allocation5 + $0xa] sm:$0x1] %vm1065_vm9, %v1113_v22 }
 0x9d4   : > { %v1123_v24 = vld [vmem:[%s1122_s24] sm:$0x1]  ;;  %1119 = vst.msk [vmem:[#allocation5 + $0xb] sm:$0x1] %vm1065_vm9, %v1118_v23 }
 0x9d5   : > { %v1128_v25 = vld [vmem:[%s1127_s13] sm:$0x1]  ;;  %1124 = vst.msk [vmem:[#allocation5 + $0xc] sm:$0x1] %vm1065_vm9, %v1123_v24 }
 0x9d6   : > { %v1133_v26 = vld [vmem:[%s1132_s10] sm:$0x1]  ;;  %1129 = vst.msk [vmem:[#allocation5 + $0xd] sm:$0x1] %vm1065_vm9, %v1128_v25 }
 0x9d7   : > { %v1138_v27 = vld [vmem:[%s1137_s11] sm:$0x1]  ;;  %1134 = vst.msk [vmem:[#allocation5 + $0xe] sm:$0x1] %vm1065_vm9, %v1133_v26  ;;  %v1140_v30 = vld [vmem:[#allocation5] sm:$0xff] }
 0x9d8   : > { %1139 = vst.msk [vmem:[#allocation5 + $0xf] sm:$0x1] %vm1065_vm9, %v1138_v27  ;;  %v3280_v32 = vadd.f32 %v1147_v28, %v1140_v30  ;;  %v1415_v13 = vld [vmem:[%s3453_s3 + $0x120] sm:$0xff] }
 0x9d9   : > { %v2612_v16 = vpack.c.bf16 %v1416_v14, %v1415_v13  ;;  %v1419_v19 = vld [vmem:[%s3453_s3 + $0x140] sm:$0xff] }
 0x9da   : > { %1162 = vrot.lane.b32.xlu1 %v3280_v32, %s2843_s25  ;;  %v1156_v39 = vrot.slane %v3280_v32, 7  ;;  %v2620_v21 = vpack.c.bf16 %v1420_v20, %v1419_v19 }
 0x9db   : > { %2613 = vmatprep.subr.bf16.mxu0 %v2612_v16 }
 0x9dc   : > { %v1161_v41 = vsel %vm320_vm4, 0.0, %v1156_v39 }
 0x9de   : > { %1182 = vrot.lane.b32.xlu1 %v2137_v35, %s2844_s19 }
 0x9df   : > { %v1141_v33 = vld [vmem:[#allocation5 + $0x8] sm:$0xff] }
 0x9e0   : > { %v3284_v34 = vadd.f32 %v1149_v31, %v1141_v33 }
 0x9e2   : > { %1164 = vrot.lane.b32.xlu0 %v3284_v34, %s2843_s25  ;;  %2753 = vrot.lane.b32.xlu1 %v2752_v37, %s2841_s27  ;;  %v1157_v40 = vrot.slane %v3284_v34, 7  ;;  %v2142_v37 = vld [vmem:[%s3453_s3 + $0x120] ss:$0 sm:$0xff] }
 0x9e4   : > { %v1158_v44 = vsel %vm320_vm4, %v1156_v39, %v1157_v40 }
 0x9e6   : > { %2748 = vrot.lane.b32.xlu0 %v2747_v36, %s2841_s27  ;;  %v2762_v36 = vpack.i.bf16 %v1416_v14, %v1415_v13  ;;  %v1661_v13 = vld [vmem:[%s3453_s3 + $0x158] sm:$0xff]  ;;  %v1662_v14 = vld [vmem:[%s3453_s3 + $0x160] sm:$0xff] }
 0x9ea   : > { %2758 = vrot.lane.b32.xlu0 %v2757_v38, %s2841_s27 }
 0xa4c   : > { %v1163_v29 = vpop.permute.xlu1 %1162 }
 0xa4d   : > { %v1168_v42 = vsel %vm1057_vm7, %v1161_v41, %v1163_v29 }
 0xa4e   : > { %2419 = vmatprep.mubr.msk.f32.mxu0 %vm1185_vm10, %v1168_v42 }
 0xa50   : > { %v1183_v46 = vpop.permute.xlu1 %1182 }
 0xa54   : > { %v1165_v43 = vpop.permute.xlu0 %1164  ;;  %v2754_v50 = vpop.permute.xlu1 %2753 }
 0xa55   : > { %v1169_v45 = vsel %vm1057_vm7, %v1158_v44, %v1165_v43  ;;  %v2756_v9 = vunpack.i.h.bf16 %v2754_v50  ;;  %v2755_v55 = vunpack.i.l.bf16 %v2754_v50 }
 0xa56   : > { %2420 = vmatmul.mubr.msk.f32.vlgmr.msra.gmra.mrb[8].mxu0 %vm1185_vm10, %v1169_v45 }
 0xa57   : > { %v2604_v57 = vpack.c.bf16 %v2756_v9, %v2755_v55  ;;  %2615 = vmatpush3.bf16.msra.mxu0 %v2612_v16  ;;  %v1663_v16 = vld [vmem:[%s3453_s3 + $0x168] sm:$0xff] }
 0xa58   : > { %v2749_v47 = vpop.permute.xlu0 %2748  ;;  %2617 = vmatprep.subr.bf16.mxu0 %v2616_v18 }
 0xa59   : > { %v2751_v52 = vunpack.i.h.bf16 %v2749_v47  ;;  %v2750_v53 = vunpack.i.l.bf16 %v2749_v47 }
 0xa5b   : > { %v2600_v56 = vpack.c.bf16 %v2751_v52, %v2750_v53  ;;  %2619 = vmatpush3.bf16.msra.mxu0 %v2616_v18  ;;  %v1664_v18 = vld [vmem:[%s3453_s3 + $0x170] sm:$0xff] }
 0xa5c   : > { %v2759_v58 = vpop.permute.xlu0 %2758  ;;  %2621 = vmatprep.subr.bf16.mxu0 %v2620_v21 }
 0xa5d   : > { %2601 = vmatprep.subr.bf16.mxu1 %v2600_v56  ;;  %v2761_v59 = vunpack.i.h.bf16 %v2759_v58  ;;  %v2760_v60 = vunpack.i.l.bf16 %v2759_v58 }
 0xa5e   : > { %2603 = vmatpush3.bf16.msra.mxu1 %v2600_v56 }
 0xa5f   : > { %v2608_v61 = vpack.c.bf16 %v2761_v59, %v2760_v60  ;;  %2605 = vmatprep.subr.bf16.mxu1 %v2604_v57  ;;  %2623 = vmatpush3.bf16.msra.mxu0 %v2620_v21 }
 0xa62   : > { %2607 = vmatpush3.bf16.msra.mxu1 %v2604_v57 }
 0xa63   : > { %2609 = vmatprep.subr.bf16.mxu1 %v2608_v61 }
 0xa66   : > { %2611 = vmatpush3.bf16.msra.mxu1 %v2608_v61 }
 0xb29   : > { %v2421_v0 = vpop.f32.mrb[8].mxu0 }
 0xb2a   : > { %v1264_v1 = vadd.f32 %v2421_v0, %v1183_v46  ;;  %v1258_v62 = vpop.f32.mrb[9].mxu0 }
 0xb2b   : > { %v1259_v63 = vadd.f32 %v1258_v62, %v1183_v46 }
 0xb2c   : > { %v1268_v2 = vmax.f32 %v1264_v1, 0.0 }
 0xb2d   : > { %v1267_v3 = vmax.f32 %v1259_v63, 0.0 }
 0xb2e   : > { %v1272_v4 = vrot.slane %v1268_v2, 7  ;;  %1279 = vrot.lane.b32.xlu0 %v1268_v2, %s2843_s25 }
 0xb2f   : > { %v1271_v5 = vrot.slane %v1267_v3, 7  ;;  %1277 = vrot.lane.b32.xlu1 %v1267_v3, %s2843_s25 }
 0xb31   : > { %v1273_v6 = vsel %vm320_vm4, %v1271_v5, %v1272_v4  ;;  %v1276_v10 = vsel %vm320_vm4, 0.0, %v1271_v5 }
 0xb33   : > { %1309 = vrot.lane.b32.xlu1 %v2137_v35, %s2845_s22 }
 0xba0   : > { %v1280_v7 = vpop.permute.xlu0 %1279 }
 0xba1   : > { %v1278_v8 = vpop.permute.xlu1 %1277  ;;  %v1284_v12 = vsel %vm1057_vm7, %v1273_v6, %v1280_v7 }
 0xba2   : > { %v1283_v11 = vsel %vm1057_vm7, %v1276_v10, %v1278_v8 }
 0xba3   : > { %2434 = vmatprep.mubr.msk.f32.mxu1 %vm1185_vm10, %v1283_v11 }
 0xba4   : > { %2435 = vmatmul.mubr.msk.f32.vlgmr.msra.gmra.mrb[8].mxu1 %vm1185_vm10, %v1284_v12  ;;  %v1660_v12 = vld [vmem:[%s3453_s3 + $0x150] sm:$0xff] }
 0xba5   : > { %v1310_v22 = vpop.permute.xlu1 %1309 }
 0xc77   : > { %v2436_v23 = vpop.f32.mrb[8].mxu1 }
 0xc78   : > { %v1390_v24 = vadd.f32 %v2436_v23, %v1310_v22  ;;  %v1384_v25 = vpop.f32.mrb[9].mxu1 }
 0xc79   : > { %v1385_v26 = vadd.f32 %v1384_v25, %v1310_v22 }
 0xc7a   : > { %v1394_v27 = vmax.f32 %v1390_v24, 0.0 }
 0xc7b   : > { %v1393_v28 = vmax.f32 %v1385_v26, 0.0 }
 0xc7c   : > { %v1396_v30 = vadd.f32 %v1394_v27, %v3284_v34  ;;  %v2772_v34 = vpack.i.bf16 %v1420_v20, %v1419_v19  ;;  %v1665_v19 = vld [vmem:[%s3453_s3 + $0x178] sm:$0xff] }
 0xc7d   : > { %v1395_v31 = vadd.f32 %v1393_v28, %v3280_v32  ;;  %v2767_v32 = vpack.i.bf16 %v1418_v17, %v1417_v15  ;;  %v2636_v15 = vpack.c.bf16 %v1661_v13, %v1660_v12  ;;  %v2640_v17 = vpack.c.bf16 %v1663_v16, %v1662_v14 }
 0xc7e   : > { %v3338_v33 = vmax.f32 %v1396_v30, 0.0  ;;  %v2644_v20 = vpack.c.bf16 %v1665_v19, %v1664_v18 }
 0xc7f   : > { %v3340_v35 = vmax.f32 %v1395_v31, 0.0  ;;  %2637 = vmatprep.subr.bf16.mxu0 %v2636_v15 }
 0xc80   : > { %1409 = vrot.lane.b32.xlu1 %v3338_v33, %s2843_s25  ;;  %v1402_v39 = vrot.slane %v3338_v33, 6 }
 0xc81   : > { %1407 = vrot.lane.b32.xlu0 %v3340_v35, %s2843_s25  ;;  %v1401_v38 = vrot.slane %v3340_v35, 6 }
 0xc83   : > { %v1406_v41 = vsel %vm540_vm6, 0.0, %v1401_v38  ;;  %v1403_v42 = vsel %vm540_vm6, %v1401_v38, %v1402_v39 }
 0xc84   : > { %2763 = vrot.lane.b32.xlu1 %v2762_v36, %s2841_s27 }
 0xc85   : > { %1427 = vrot.lane.b32.xlu0 %v2142_v37, %s2844_s19 }
 0xc88   : > { %2773 = vrot.lane.b32.xlu1 %v2772_v34, %s2841_s27  ;;  %v2147_v34 = vld [vmem:[%s3453_s3 + $0x150] ss:$0 sm:$0xff] }
 0xc89   : > { %2768 = vrot.lane.b32.xlu0 %v2767_v32, %s2841_s27 }
 0xcf2   : > { %v1410_v40 = vpop.permute.xlu1 %1409 }
 0xcf3   : > { %v1408_v29 = vpop.permute.xlu0 %1407  ;;  %v1414_v44 = vsel %vm1057_vm7, %v1403_v42, %v1410_v40 }
 0xcf4   : > { %v1413_v43 = vsel %vm1057_vm7, %v1406_v41, %v1408_v29 }
 0xcf5   : > { %2449 = vmatprep.mubr.msk.f32.mxu0 %vm1185_vm10, %v1413_v43 }
 0xcf6   : > { %2450 = vmatmul.mubr.msk.f32.vlgmr.msra.gmra.mrb[10].mxu0 %vm1185_vm10, %v1414_v44  ;;  %v2764_v46 = vpop.permute.xlu1 %2763 }
 0xcf7   : > { %v1428_v45 = vpop.permute.xlu0 %1427  ;;  %v2766_v50 = vunpack.i.h.bf16 %v2764_v46  ;;  %v2765_v52 = vunpack.i.l.bf16 %v2764_v46  ;;  %2639 = vmatpush3.bf16.msra.mxu0 %v2636_v15 }
 0xcf8   : > { %2641 = vmatprep.subr.bf16.mxu0 %v2640_v17 }
 0xcf9   : > { %v2624_v55 = vpack.c.bf16 %v2766_v50, %v2765_v52 }
 0xcfa   : > { %v2774_v57 = vpop.permute.xlu1 %2773 }
 0xcfb   : > { %v2769_v47 = vpop.permute.xlu0 %2768  ;;  %2625 = vmatprep.subr.bf16.mxu1 %v2624_v55  ;;  %v2776_v58 = vunpack.i.h.bf16 %v2774_v57  ;;  %v2775_v59 = vunpack.i.l.bf16 %v2774_v57  ;;  %2643 = vmatpush3.bf16.msra.mxu0 %v2640_v17 }
 0xcfc   : > { %v2771_v53 = vunpack.i.h.bf16 %v2769_v47  ;;  %v2770_v9 = vunpack.i.l.bf16 %v2769_v47  ;;  %2627 = vmatpush3.bf16.msra.mxu1 %v2624_v55  ;;  %2645 = vmatprep.subr.bf16.mxu0 %v2644_v20 }
 0xcfd   : > { %v2632_v60 = vpack.c.bf16 %v2776_v58, %v2775_v59 }
 0xcfe   : > { %v2628_v56 = vpack.c.bf16 %v2771_v53, %v2770_v9 }
 0xcff   : > { %2647 = vmatpush3.bf16.msra.mxu0 %v2644_v20 }
 0xd00   : > { %2629 = vmatprep.subr.bf16.mxu1 %v2628_v56 }
 0xd01   : > { %2631 = vmatpush3.bf16.msra.mxu1 %v2628_v56 }
 0xd02   : > { %2633 = vmatprep.subr.bf16.mxu1 %v2632_v60 }
 0xd05   : > { %2635 = vmatpush3.bf16.msra.mxu1 %v2632_v60 }
 0xdc9   : > { %v2451_v61 = vpop.f32.mrb[10].mxu0 }
 0xdca   : > { %v1508_v0 = vadd.f32 %v2451_v61, %v1428_v45  ;;  %v1502_v1 = vpop.f32.mrb[11].mxu0 }
 0xdcb   : > { %v1503_v62 = vadd.f32 %v1502_v1, %v1428_v45 }
 0xdcc   : > { %v1512_v63 = vmax.f32 %v1508_v0, 0.0 }
 0xdcd   : > { %v1511_v2 = vmax.f32 %v1503_v62, 0.0 }
 0xdce   : > { %v1516_v3 = vrot.slane %v1512_v63, 6  ;;  %1523 = vrot.lane.b32.xlu1 %v1512_v63, %s2843_s25 }
 0xdcf   : > { %v1515_v4 = vrot.slane %v1511_v2, 6  ;;  %1521 = vrot.lane.b32.xlu0 %v1511_v2, %s2843_s25 }
 0xdd1   : > { %v1517_v5 = vsel %vm540_vm6, %v1515_v4, %v1516_v3  ;;  %v1520_v8 = vsel %vm540_vm6, 0.0, %v1515_v4  ;;  %v2792_v3 = vpack.i.bf16 %v3131_v49, %v3126_v48 }
 0xdd3   : > { %1553 = vrot.lane.b32.xlu0 %v2142_v37, %s2845_s22  ;;  %v2777_v37 = vpack.i.bf16 %v1661_v13, %v1660_v12 }
 0xe40   : > { %v1524_v6 = vpop.permute.xlu1 %1523 }
 0xe41   : > { %v1522_v7 = vpop.permute.xlu0 %1521  ;;  %v1528_v11 = vsel %vm1057_vm7, %v1517_v5, %v1524_v6 }
 0xe42   : > { %v1527_v10 = vsel %vm1057_vm7, %v1520_v8, %v1522_v7 }
 0xe43   : > { %2464 = vmatprep.mubr.msk.f32.mxu1 %vm1185_vm10, %v1527_v10 }
 0xe44   : > { %2465 = vmatmul.mubr.msk.f32.vlgmr.msra.gmra.mrb[10].mxu1 %vm1185_vm10, %v1528_v11 }
 0xe45   : > { %v1554_v21 = vpop.permute.xlu0 %1553 }
 0xf17   : > { %v2466_v22 = vpop.f32.mrb[10].mxu1 }
 0xf18   : > { %v1634_v23 = vadd.f32 %v2466_v22, %v1554_v21  ;;  %v1628_v24 = vpop.f32.mrb[11].mxu1 }
 0xf19   : > { %v1629_v25 = vadd.f32 %v1628_v24, %v1554_v21 }
 0xf1a   : > { %v1638_v26 = vmax.f32 %v1634_v23, 0.0 }
 0xf1b   : > { %v1637_v27 = vmax.f32 %v1629_v25, 0.0 }
 0xf1c   : > { %v1640_v28 = vadd.f32 %v1638_v26, %v3338_v33  ;;  %v2787_v33 = vpack.i.bf16 %v1665_v19, %v1664_v18 }
 0xf1d   : > { %v1639_v30 = vadd.f32 %v1637_v27, %v3340_v35  ;;  %v2782_v35 = vpack.i.bf16 %v1663_v16, %v1662_v14 }
 0xf1e   : > { %v3390_v31 = vmax.f32 %v1640_v28, 0.0 }
 0xf1f   : > { %v3392_v36 = vmax.f32 %v1639_v30, 0.0  ;;  %v2797_v30 = vld [vmem:[%s2920_s15 + $0x8] sm:$0xff] }
 0xf20   : > { %1654 = vrot.lane.b32.xlu0 %v3390_v31, %s2843_s25  ;;  %v1647_v38 = vrot.slane %v3390_v31, 4 }
 0xf21   : > { %1652 = vrot.lane.b32.xlu1 %v3392_v36, %s2843_s25  ;;  %v1646_v32 = vrot.slane %v3392_v36, 4 }
 0xf23   : > { %v1651_v29 = vsel %vm1645_vm11, 0.0, %v1646_v32  ;;  %v1648_v41 = vsel %vm1645_vm11, %v1646_v32, %v1647_v38 }
 0xf24   : > { %2778 = vrot.lane.b32.xlu0 %v2777_v37, %s2841_s27 }
 0xf25   : > { %1672 = vrot.lane.b32.xlu1 %v2147_v34, %s2844_s19 }
 0xf28   : > { %2788 = vrot.lane.b32.xlu0 %v2787_v33, %s2841_s27 }
 0xf29   : > { %2783 = vrot.lane.b32.xlu1 %v2782_v35, %s2841_s27  ;;  %s3459_s27 = smov 64  }
 0xf92   : > { %v1655_v39 = vpop.permute.xlu0 %1654 }
 0xf93   : > { %v1653_v40 = vpop.permute.xlu1 %1652  ;;  %v1659_v43 = vsel %vm1057_vm7, %v1648_v41, %v1655_v39 }
 0xf94   : > { %v1658_v42 = vsel %vm1057_vm7, %v1651_v29, %v1653_v40 }
 0xf95   : > { %2479 = vmatprep.mubr.msk.f32.mxu0 %vm1185_vm10, %v1658_v42 }
 0xf96   : > { %2480 = vmatmul.mubr.msk.f32.vlgmr.msra.gmra.mrb[12].mxu0 %vm1185_vm10, %v1659_v43  ;;  %v2779_v45 = vpop.permute.xlu0 %2778 }
 0xf97   : > { %v1673_v44 = vpop.permute.xlu1 %1672  ;;  %v2781_v47 = vunpack.i.h.bf16 %v2779_v45  ;;  %v2780_v50 = vunpack.i.l.bf16 %v2779_v45 }
 0xf99   : > { %v2648_v9 = vpack.c.bf16 %v2781_v47, %v2780_v50 }
 0xf9a   : > { %v2789_v56 = vpop.permute.xlu0 %2788 }
 0xf9b   : > { %v2784_v46 = vpop.permute.xlu1 %2783  ;;  %2649 = vmatprep.subr.bf16.mxu1 %v2648_v9  ;;  %v2791_v57 = vunpack.i.h.bf16 %v2789_v56  ;;  %v2790_v58 = vunpack.i.l.bf16 %v2789_v56 }
 0xf9c   : > { %v2786_v52 = vunpack.i.h.bf16 %v2784_v46  ;;  %v2785_v53 = vunpack.i.l.bf16 %v2784_v46  ;;  %2651 = vmatpush3.bf16.msra.mxu1 %v2648_v9 }
 0xf9d   : > { %v2656_v59 = vpack.c.bf16 %v2791_v57, %v2790_v58 }
 0xf9e   : > { %v2652_v55 = vpack.c.bf16 %v2786_v52, %v2785_v53 }
 0xfa0   : > { %2653 = vmatprep.subr.bf16.mxu1 %v2652_v55 }
 0xfa1   : > { %2655 = vmatpush3.bf16.msra.mxu1 %v2652_v55 }
 0xfa2   : > { %2657 = vmatprep.subr.bf16.mxu1 %v2656_v59 }
 0xfa5   : > { %2659 = vmatpush3.bf16.msra.mxu1 %v2656_v59 }
0x1069   : > { %v2481_v60 = vpop.f32.mrb[12].mxu0 }
0x106a   : > { %v1753_v61 = vadd.f32 %v2481_v60, %v1673_v44  ;;  %v1747_v0 = vpop.f32.mrb[13].mxu0 }
0x106b   : > { %v1748_v1 = vadd.f32 %v1747_v0, %v1673_v44 }
0x106c   : > { %v1757_v62 = vmax.f32 %v1753_v61, 0.0 }
0x106d   : > { %v1756_v63 = vmax.f32 %v1748_v1, 0.0 }
0x106e   : > { %v1761_v2 = vrot.slane %v1757_v62, 4  ;;  %1768 = vrot.lane.b32.xlu0 %v1757_v62, %s2843_s25 }
0x106f   : > { %v1760_v4 = vrot.slane %v1756_v63, 4  ;;  %1766 = vrot.lane.b32.xlu1 %v1756_v63, %s2843_s25  ;;  %s3460_s25 = sshll.u32 %s2909_s9, 4 }
0x1070   : > { %s188_s30 = scalar_lea.vmem %s3454_s4, %s3460_s25 }
0x1071   : > { %v1762_v5 = vsel %vm1645_vm11, %v1760_v4, %v1761_v2  ;;  %v1765_v8 = vsel %vm1645_vm11, 0.0, %v1760_v4 }
0x1072   : > { %2793 = vrot.lane.b32.xlu0 %v2792_v3, %s2844_s19 }
0x1073   : > { %1798 = vrot.lane.b32.xlu1 %v2147_v34, %s2845_s22 }
0x1076   : > { %1909 = vrot.lane.b32.xlu0 %v3148_v54, %s3459_s27 }
0x1077   : > { %1903 = vrot.lane.b32.xlu1 %v3139_v51, %s2844_s19 }
0x10e0   : > { %v1769_v6 = vpop.permute.xlu0 %1768 }
0x10e1   : > { %v1767_v7 = vpop.permute.xlu1 %1766  ;;  %v1773_v49 = vsel %vm1057_vm7, %v1762_v5, %v1769_v6 }
0x10e2   : > { %v1772_v48 = vsel %vm1057_vm7, %v1765_v8, %v1767_v7 }
0x10e3   : > { %2494 = vmatprep.mubr.msk.f32.mxu1 %vm1185_vm10, %v1772_v48 }
0x10e4   : > { %2495 = vmatmul.mubr.msk.f32.vlgmr.msra.gmra.mrb[12].mxu1 %vm1185_vm10, %v1773_v49  ;;  %v2794_v10 = vpop.permute.xlu0 %2793 }
0x10e5   : > { %v2796_v11 = vunpack.i.h.bf16 %v2794_v10  ;;  %v2795_v12 = vunpack.i.l.bf16 %v2794_v10  ;;  %v1799_v54 = vpop.permute.xlu1 %1798 }
0x10e7   : > { %v2660_v13 = vpack.c.bf16 %v2796_v11, %v2795_v12 }
0x10e8   : > { %v1910_v24 = vpop.permute.xlu0 %1909 }
0x10e9   : > { %2661 = vmatprep.subr.bf16.mxu0 %v2660_v13  ;;  %v1904_v51 = vpop.permute.xlu1 %1903 }
0x10ea   : > { %2663 = vmatpush3.bf16.msra.mxu0 %v2660_v13 }
0x10eb   : > { %2501 = vmatprep.subr.mxu0 %v1904_v51 }
0x10ee   : > { %2502 = vmatpush3.msra.mxu0 %v1904_v51 }
0x11b7   : > { %v2496_v14 = vpop.f32.mrb[12].mxu1 }
0x11b8   : > { %v1879_v15 = vadd.f32 %v2496_v14, %v1799_v54  ;;  %v1873_v16 = vpop.f32.mrb[13].mxu1 }
0x11b9   : > { %v1874_v17 = vadd.f32 %v1873_v16, %v1799_v54 }
0x11ba   : > { %v1883_v18 = vmax.f32 %v1879_v15, 0.0 }
0x11bb   : > { %v1882_v19 = vmax.f32 %v1874_v17, 0.0 }
0x11bc   : > { %v1885_v20 = vadd.f32 %v1883_v18, %v3390_v31 }
0x11bd   : > { %v1884_v21 = vadd.f32 %v1882_v19, %v3392_v36  ;;  %v2798_v36 = vld [vmem:[%s2920_s15] sm:$0xff] }
0x11be   : > { %v1887_v23 = vmax.f32 %v1885_v20, 0.0 }
0x11bf   : > { %v1886_v22 = vmax.f32 %v1884_v21, 0.0 }
0x11c1   : > { %2503 = vmatprep.mubr.msk.f32.mxu0 %vm1057_vm7, %v1886_v22 }
0x11c2   : > { %2504 = vmatmul.mubr.msk.f32.vlgmr.msra.gmra.mrb[14].mxu0 %vm1057_vm7, %v1887_v23 }
0x1295   : > { %v2505_v25 = vpop.f32.mrb[14].mxu0 }
0x1296   : > { %v1990_v26 = vadd.f32 %v2505_v25, %v1910_v24  ;;  %v1984_v27 = vpop.f32.mrb[15].mxu0 }
0x1297   : > { %v1985_v28 = vadd.f32 %v1984_v27, %v1910_v24 }
0x1298   : > { %1994 = vst.msk [vmem:[%s188_s30 + $0x8] sm:$0xff] %vm205_vm0, %v1990_v26  ;;  %v1996_v31 = vsub.f32 %v1990_v26, %v2797_v30 }
0x1299   : > { %1993 = vst.msk [vmem:[%s188_s30] sm:$0xff] %vm205_vm0, %v1985_v28  ;;  %v1995_v37 = vsub.f32 %v1985_v28, %v2798_v36 }
0x129a   : > { %v1998_v34 = vmul.f32 %v1996_v31, %v1996_v31 }
0x129b   : > { %v1997_v33 = vmul.f32 %v1995_v37, %v1995_v37 }
0x129c   : > { %v2000_v35 = vsel %vm205_vm0, %v1998_v34, 0.0 }
0x129d   : > { %v1999_v32 = vsel %vm205_vm0, %v1997_v33, 0.0 }
0x129e   : > { %v2001_v38 = vadd.f32 %v2000_v35, %v1999_v32 }
0x12a0   : > { %2002 = vadd.xlane.f32.xlu1 %v2001_v38 }
0x132d   : > { %v2003_v39 = vpop.xlane.xlu1 %2002 }
0x132e   : > { %v2004_v40 = vrot.slane %v2003_v39, 4 }
0x1330   : > { %v2005_v29 = vadd.f32 %v2004_v40, %v2003_v39 }
0x1332   : > { %v2006_v41 = vrot.slane %v2005_v29, 2 }
0x1334   : > { %v2007_v42 = vadd.f32 %v2006_v41, %v2005_v29 }
0x1336   : > { %v2008_v43 = vrot.slane %v2007_v42, 1 }
0x1338   : > { %v2009_v44 = vadd.f32 %v2008_v43, %v2007_v42 }
0x133a   : > { %2664 = vpush %v2009_v44 }
0x136b   : > { %s2665_s16 = spop %2664 }
0x136c   : > { %v2011_v45 = vstv %s2665_s16 }
0x136d   : > { %2013 = vst.msk [vmem:[%s191_s14] sm:$0x1] %vm2012_vm12, %v2011_v45 }
0x136e PF: > { %s26_s1 = sadd.s32 1, %s2831_s1  }
0x136f   : > { %p23_p0 = scmp.ge.s32.totalorder %s26_s1, 4  }
0x1371   :  { %25 = sbr.rel (!%p23_p0) target bundleno = 26 (0x1a), region = 89 }

</bundles_post_ra>
